<compile_context>
chip_gen: v7x
topology: tpu7x:2x2x1
jax: 0.10.0
libtpu: 0.0.40
codegen_flags: <defaults>
</compile_context>

<pallas_src>
import functools
import math

import jax
import jax.numpy as jnp
from jax.experimental import pallas as pl
from jax.experimental.pallas import tpu as pltpu


def cross_att_kernel(x_ref, x2_ref, wx_ref, wa_ref, o_ref, *, num_heads):
    # x_ref:  (bb, N, C) bf16   stream 1 (produces q, k, v)
    # x2_ref: (bb, N, C) bf16   stream 2 (produces A)
    # wx_ref: (C, 3C)    bf16   [Wq^T | Wk^T | Wv^T]  fused projection for x
    # wa_ref: (C, C)     bf16   Wa^T * scale          projection for x2
    # o_ref:  (bb, N, C) f32
    bb, N, C = x_ref.shape
    H = num_heads
    D = C // H

    x = x_ref[...].reshape(bb * N, C)      # (bb*N, C) bf16
    x2 = x2_ref[...].reshape(bb * N, C)    # (bb*N, C) bf16

    # Fused projections: one lane-dense matmul per stream, whole batch block.
    qkv = jnp.dot(x, wx_ref[...], preferred_element_type=jnp.float32)   # (bb*N, 3C) f32
    a_f = jnp.dot(x2, wa_ref[...], preferred_element_type=jnp.float32)  # (bb*N, C)  f32, scale pre-folded

    # Cast once to bf16 for the MXU; per-head slices below then move half the bytes.
    q = qkv[:, :C].astype(jnp.bfloat16)
    k = qkv[:, C:2 * C].astype(jnp.bfloat16)
    v = qkv[:, 2 * C:].astype(jnp.bfloat16)
    a = a_f.astype(jnp.bfloat16)

    def softmax(s):
        # f32 math (v5e has no bf16 VPU/EUP); reciprocal goes to the EUP slot.
        m = jnp.max(s, axis=-1, keepdims=True)
        e = jnp.exp(s - m)
        r = pl.reciprocal(jnp.sum(e, axis=-1, keepdims=True), approx=True)
        return (e * r).astype(jnp.bfloat16)

    # Per-head attention (heads occupy contiguous D-wide column blocks); each
    # head's products are batched over the bb batches with a leading batch dim.
    outs = []
    for h in range(H):
        sl = slice(h * D, (h + 1) * D)
        q_h = q[:, sl].reshape(bb, N, D)
        a_h = a[:, sl].reshape(bb, N, D)
        k_h = k[:, sl].reshape(bb, N, D)
        v_h = v[:, sl].reshape(bb, N, D)

        # scale already folded into a_h via the wrapper-side weight transform.
        s_q = jnp.einsum('bnd,bmd->bnm', q_h, a_h,
                         preferred_element_type=jnp.float32)   # (bb, N, N)
        s_k = jnp.einsum('bnd,bmd->bnm', a_h, k_h,
                         preferred_element_type=jnp.float32)   # (bb, N, N)

        p_q = softmax(s_q)          # bf16
        p_k = softmax(s_k)          # bf16

        ctx = jnp.einsum('bnm,bmd->bnd', p_k, v_h,
                         preferred_element_type=jnp.float32).astype(jnp.bfloat16)
        out_h = jnp.einsum('bnm,bmd->bnd', p_q, ctx,
                           preferred_element_type=jnp.float32)  # (bb, N, D) f32
        outs.append(out_h)

    # transpose(1,2).reshape(B,N,C) in the reference == heads concatenated along
    # the channel axis -> one dense (bb, N, C) store instead of H narrow stores.
    o_ref[...] = jnp.concatenate(outs, axis=-1).astype(o_ref.dtype)


def cross_att(x, x2, wq, wa, wkv, *, num_heads):
    """x, x2: (B, N, C). wq, wa: (C, C); wkv: (2C, C)  (PyTorch (out,in) layout)."""
    B, N, C = x.shape
    assert C % num_heads == 0
    D = C // num_heads
    scale = D ** (-0.5)

    # Weight prep (once, in the wrapper): nn.Linear computes y = x @ W^T, so
    # pre-transpose; fuse q/k/v into one lane-dense matmul; fold the attention
    # scale into the A weight (both scores contain exactly one factor of A);
    # cast everything the MXU touches to bf16.
    wx = jnp.concatenate([wq.T, wkv.T], axis=1).astype(jnp.bfloat16)   # (C, 3C)
    wa_t = (wa.T * scale).astype(jnp.bfloat16)                         # (C, C)
    x_bf = x.astype(jnp.bfloat16)
    x2_bf = x2.astype(jnp.bfloat16)

    # Batch blocking: keep exactly two evenly weighted grid steps when possible
    # (one per v7x TensorCore, only one extra serial epoch on v5e/v6e), while
    # giving the projection matmuls block_b*N rows at once. Keep the per-step
    # working set modest.
    block_b = B
    while (block_b > 1 and block_b % 2 == 0
           and (B // block_b < 2 or block_b * N * C * 4 > 2 * 1024 * 1024)):
        block_b //= 2
    grid = (B // block_b,)

    # Right-sized VMEM request: double-buffered in/out blocks + resident weights
    # + headroom for intermediates.  Stays a few MiB (v7x has only 64 MiB/TC).
    bytes_in = 2 * block_b * N * C * 2            # x, x2 blocks (bf16)
    bytes_w = (C * 3 * C + C * C) * 2             # fused weights (bf16)
    bytes_out = block_b * N * C * 4               # output block (f32)
    vmem_bytes = 4 * (2 * bytes_in + 2 * bytes_w + 2 * bytes_out) + (2 << 20)

    flops = (2 * B * N * C * 3 * C + 2 * B * N * C * C
             + B * num_heads * 4 * 2 * N * N * D)
    transcendentals = B * num_heads * 2 * N * N
    bytes_accessed = 2 * (2 * B * N * C) + bytes_w + B * N * C * 4

    kernel = functools.partial(cross_att_kernel, num_heads=num_heads)

    return pl.pallas_call(
        kernel,
        out_shape=jax.ShapeDtypeStruct((B, N, C), jnp.float32),
        grid_spec=pltpu.PrefetchScalarGridSpec(
            num_scalar_prefetch=0,
            grid=grid,
            in_specs=[
                pl.BlockSpec((block_b, N, C), lambda i: (i, 0, 0)),
                pl.BlockSpec((block_b, N, C), lambda i: (i, 0, 0)),
                pl.BlockSpec((C, 3 * C), lambda i: (0, 0)),
                pl.BlockSpec((C, C), lambda i: (0, 0)),
            ],
            out_specs=pl.BlockSpec((block_b, N, C), lambda i: (i, 0, 0)),
        ),
        compiler_params=pltpu.CompilerParams(
            dimension_semantics=("parallel",),
            vmem_limit_bytes=int(vmem_bytes),
        ),
        cost_estimate=pl.CostEstimate(
            flops=flops,
            transcendentals=transcendentals,
            bytes_accessed=bytes_accessed),
    )(x_bf, x2_bf, wx, wa_t)


def reference(x, x2, wq, wa, wkv, *, num_heads):
    """Pure-JAX mirror of the PyTorch forward (dropout = identity, eval mode)."""
    B, N, C = x.shape
    H = num_heads
    D = C // H
    scale = D ** (-0.5)
    hp = jax.lax.Precision.HIGHEST

    q = jnp.einsum('bnc,oc->bno', x, wq, precision=hp)
    q = q.reshape(B, N, H, D).transpose(0, 2, 1, 3)
    a = jnp.einsum('bnc,oc->bno', x2, wa, precision=hp)
    a = a.reshape(B, N, H, D).transpose(0, 2, 1, 3)
    kv = jnp.einsum('bnc,oc->bno', x, wkv, precision=hp)
    kv = kv.reshape(B, N, 2, H, D).transpose(2, 0, 3, 1, 4)
    k, v = kv[0], kv[1]

    att_q = jax.nn.softmax(
        jnp.einsum('bhnd,bhmd->bhnm', q, a, precision=hp) * scale, axis=-1)
    att_k = jax.nn.softmax(
        jnp.einsum('bhnd,bhmd->bhnm', a, k, precision=hp) * scale, axis=-1)

    ctx = jnp.einsum('bhnm,bhmd->bhnd', att_k, v, precision=hp)
    out = jnp.einsum('bhnm,bhmd->bhnd', att_q, ctx, precision=hp)
    return out.transpose(0, 2, 1, 3).reshape(B, N, C)


if __name__ == "__main__":
    key = jax.random.PRNGKey(0)
    k_x, k_x2, k_q, k_a, k_kv = jax.random.split(key, 5)

    # dim=32, num_heads=8 (module default) -> head_dim=4; seq=16, batch=2.
    B, N, C, H = 2, 16, 32, 8
    x = jax.random.normal(k_x, (B, N, C), jnp.float32)
    x2 = jax.random.normal(k_x2, (B, N, C), jnp.float32)

    # Deterministic synthetic Linear weights (PyTorch (out,in) layout, no bias
    # since qkv_bias=False by default).
    bound = 1.0 / math.sqrt(C)
    wq = jax.random.uniform(k_q, (C, C), jnp.float32, -bound, bound)
    wa = jax.random.uniform(k_a, (C, C), jnp.float32, -bound, bound)
    wkv = jax.random.uniform(k_kv, (2 * C, C), jnp.float32, -bound, bound)

    out = jax.block_until_ready(cross_att(x, x2, wq, wa, wkv, num_heads=H))
    ref = jax.block_until_ready(reference(x, x2, wq, wa, wkv, num_heads=H))

    assert out.shape == (B, N, C)
    max_err = float(jnp.max(jnp.abs(out - ref)))
    # bf16 MXU operands + EUP approx reciprocal -> looser tolerance than the
    # f32/HIGHEST reference (errors observed are well inside this bound).
    assert jnp.allclose(out, ref, atol=2e-2, rtol=2e-2), max_err
    print("KERNEL_OK")
</pallas_src>

<mosaic_0001>
module attributes {stable_mosaic.version = 11 : i64} {
  func.func @cross_att_kernel(%arg0: i32, %arg1: memref<1x16x32xbf16, #tpu.memory_space<vmem>>, %arg2: memref<1x16x32xbf16, #tpu.memory_space<vmem>>, %arg3: memref<32x96xbf16, #tpu.memory_space<vmem>>, %arg4: memref<32x32xbf16, #tpu.memory_space<vmem>>, %arg5: memref<1x16x32xf32, #tpu.memory_space<vmem>>) attributes {dimension_semantics = [#tpu.dimension_semantics<parallel>], iteration_bounds = array<i64: 2>, scalar_prefetch = 0 : i64, scratch_operands = 0 : i64, tpu.core_type = #tpu.core_type<tc>, window_params = [{transform_indices = @transform_0, window_bounds = array<i64: 1, 16, 32>}, {transform_indices = @transform_1, window_bounds = array<i64: 1, 16, 32>}, {pipeline_mode = #tpu.pipeline_mode<synchronous>, transform_indices = @transform_2, window_bounds = array<i64: 32, 96>}, {pipeline_mode = #tpu.pipeline_mode<synchronous>, transform_indices = @transform_3, window_bounds = array<i64: 32, 32>}, {transform_indices = @transform_4, window_bounds = array<i64: 1, 16, 32>}]} {
    %c0 = arith.constant 0 : index
    %c0_0 = arith.constant 0 : index
    %c0_1 = arith.constant 0 : index
    %0 = vector.load %arg1[%c0, %c0_0, %c0_1] : memref<1x16x32xbf16, #tpu.memory_space<vmem>>, vector<1x16x32xbf16>
    %1 = vector.shape_cast %0 : vector<1x16x32xbf16> to vector<16x32xbf16>
    %c0_2 = arith.constant 0 : index
    %c0_3 = arith.constant 0 : index
    %c0_4 = arith.constant 0 : index
    %2 = vector.load %arg2[%c0_2, %c0_3, %c0_4] : memref<1x16x32xbf16, #tpu.memory_space<vmem>>, vector<1x16x32xbf16>
    %3 = vector.shape_cast %2 : vector<1x16x32xbf16> to vector<16x32xbf16>
    %c0_5 = arith.constant 0 : index
    %c0_6 = arith.constant 0 : index
    %4 = vector.load %arg3[%c0_5, %c0_6] : memref<32x96xbf16, #tpu.memory_space<vmem>>, vector<32x96xbf16>
    %cst = arith.constant dense<0.000000e+00> : vector<16x96xf32>
    %5 = tpu.matmul %1, %4, %cst {dimension_numbers = #tpu.dot_dimension_numbers<[1], [0], [0], [1], [0, 0, 1, 1], [], []>} : vector<16x32xbf16>, vector<32x96xbf16>, vector<16x96xf32> -> vector<16x96xf32>
    %c0_7 = arith.constant 0 : index
    %c0_8 = arith.constant 0 : index
    %6 = vector.load %arg4[%c0_7, %c0_8] : memref<32x32xbf16, #tpu.memory_space<vmem>>, vector<32x32xbf16>
    %cst_9 = arith.constant dense<0.000000e+00> : vector<16x32xf32>
    %7 = tpu.matmul %3, %6, %cst_9 {dimension_numbers = #tpu.dot_dimension_numbers<[1], [0], [0], [1], [0, 0, 1, 1], [], []>} : vector<16x32xbf16>, vector<32x32xbf16>, vector<16x32xf32> -> vector<16x32xf32>
    %8 = vector.extract_strided_slice %5 {offsets = [0, 0], sizes = [16, 32], strides = [1, 1]} : vector<16x96xf32> to vector<16x32xf32>
    %9 = arith.truncf %8 : vector<16x32xf32> to vector<16x32xbf16>
    %10 = vector.extract_strided_slice %5 {offsets = [0, 32], sizes = [16, 32], strides = [1, 1]} : vector<16x96xf32> to vector<16x32xf32>
    %11 = arith.truncf %10 : vector<16x32xf32> to vector<16x32xbf16>
    %12 = vector.extract_strided_slice %5 {offsets = [0, 64], sizes = [16, 32], strides = [1, 1]} : vector<16x96xf32> to vector<16x32xf32>
    %13 = arith.truncf %12 : vector<16x32xf32> to vector<16x32xbf16>
    %14 = arith.truncf %7 : vector<16x32xf32> to vector<16x32xbf16>
    %15 = vector.extract_strided_slice %9 {offsets = [0, 0], sizes = [16, 4], strides = [1, 1]} : vector<16x32xbf16> to vector<16x4xbf16>
    %16 = vector.shape_cast %15 : vector<16x4xbf16> to vector<1x16x4xbf16>
    %17 = vector.extract_strided_slice %14 {offsets = [0, 0], sizes = [16, 4], strides = [1, 1]} : vector<16x32xbf16> to vector<16x4xbf16>
    %18 = vector.shape_cast %17 : vector<16x4xbf16> to vector<1x16x4xbf16>
    %19 = vector.extract_strided_slice %11 {offsets = [0, 0], sizes = [16, 4], strides = [1, 1]} : vector<16x32xbf16> to vector<16x4xbf16>
    %20 = vector.shape_cast %19 : vector<16x4xbf16> to vector<1x16x4xbf16>
    %21 = vector.extract_strided_slice %13 {offsets = [0, 0], sizes = [16, 4], strides = [1, 1]} : vector<16x32xbf16> to vector<16x4xbf16>
    %22 = vector.shape_cast %21 : vector<16x4xbf16> to vector<1x16x4xbf16>
    "tpu.trace_start"() <{level = 10 : i32, message = "bnd,bmd->bnm"}> : () -> ()
    %cst_10 = arith.constant dense<0.000000e+00> : vector<1x16x16xf32>
    %23 = tpu.matmul %16, %18, %cst_10 {dimension_numbers = #tpu.dot_dimension_numbers<[2], [2], [1], [1], [0, 0, 0, 1, 1, 1], [0], [0]>} : vector<1x16x4xbf16>, vector<1x16x4xbf16>, vector<1x16x16xf32> -> vector<1x16x16xf32>
    %cst_11 = arith.constant dense<0.000000e+00> : vector<1x16x16xf32>
    %24 = tpu.matmul %18, %20, %cst_11 {dimension_numbers = #tpu.dot_dimension_numbers<[2], [2], [1], [1], [0, 0, 0, 1, 1, 1], [0], [0]>} : vector<1x16x4xbf16>, vector<1x16x4xbf16>, vector<1x16x16xf32> -> vector<1x16x16xf32>
    "tpu.trace_stop"() : () -> ()
    %cst_12 = arith.constant dense<0xFF800000> : vector<1x16xf32>
    %25 = vector.multi_reduction <maximumf>, %23, %cst_12 [2] : vector<1x16x16xf32> to vector<1x16xf32>
    %26 = vector.shape_cast %25 : vector<1x16xf32> to vector<1x16x1xf32>
    %27 = vector.broadcast %26 : vector<1x16x1xf32> to vector<1x16x16xf32>
    %28 = arith.subf %23, %27 : vector<1x16x16xf32>
    %29 = math.exp %28 : vector<1x16x16xf32>
    %cst_13 = arith.constant dense<0.000000e+00> : vector<1x16xf32>
    %30 = vector.multi_reduction <add>, %29, %cst_13 [2] : vector<1x16x16xf32> to vector<1x16xf32>
    %31 = vector.shape_cast %30 : vector<1x16xf32> to vector<1x16x1xf32>
    %32 = tpu.reciprocal %31 {approx = true} : vector<1x16x1xf32> -> vector<1x16x1xf32>
    %33 = vector.broadcast %32 : vector<1x16x1xf32> to vector<1x16x16xf32>
    %34 = arith.mulf %29, %33 : vector<1x16x16xf32>
    %35 = arith.truncf %34 : vector<1x16x16xf32> to vector<1x16x16xbf16>
    %cst_14 = arith.constant dense<0xFF800000> : vector<1x16xf32>
    %36 = vector.multi_reduction <maximumf>, %24, %cst_14 [2] : vector<1x16x16xf32> to vector<1x16xf32>
    %37 = vector.shape_cast %36 : vector<1x16xf32> to vector<1x16x1xf32>
    %38 = vector.broadcast %37 : vector<1x16x1xf32> to vector<1x16x16xf32>
    %39 = arith.subf %24, %38 : vector<1x16x16xf32>
    %40 = math.exp %39 : vector<1x16x16xf32>
    %cst_15 = arith.constant dense<0.000000e+00> : vector<1x16xf32>
    %41 = vector.multi_reduction <add>, %40, %cst_15 [2] : vector<1x16x16xf32> to vector<1x16xf32>
    %42 = vector.shape_cast %41 : vector<1x16xf32> to vector<1x16x1xf32>
    %43 = tpu.reciprocal %42 {approx = true} : vector<1x16x1xf32> -> vector<1x16x1xf32>
    %44 = vector.broadcast %43 : vector<1x16x1xf32> to vector<1x16x16xf32>
    %45 = arith.mulf %40, %44 : vector<1x16x16xf32>
    %46 = arith.truncf %45 : vector<1x16x16xf32> to vector<1x16x16xbf16>
    "tpu.trace_start"() <{level = 10 : i32, message = "bnm,bmd->bnd"}> : () -> ()
    %cst_16 = arith.constant dense<0.000000e+00> : vector<1x16x4xf32>
    %47 = tpu.matmul %46, %22, %cst_16 {dimension_numbers = #tpu.dot_dimension_numbers<[2], [1], [1], [2], [0, 0, 0, 1, 1, 2], [0], [0]>} : vector<1x16x16xbf16>, vector<1x16x4xbf16>, vector<1x16x4xf32> -> vector<1x16x4xf32>
    "tpu.trace_stop"() : () -> ()
    %48 = arith.truncf %47 : vector<1x16x4xf32> to vector<1x16x4xbf16>
    "tpu.trace_start"() <{level = 10 : i32, message = "bnm,bmd->bnd"}> : () -> ()
    %cst_17 = arith.constant dense<0.000000e+00> : vector<1x16x4xf32>
    %49 = tpu.matmul %35, %48, %cst_17 {dimension_numbers = #tpu.dot_dimension_numbers<[2], [1], [1], [2], [0, 0, 0, 1, 1, 2], [0], [0]>} : vector<1x16x16xbf16>, vector<1x16x4xbf16>, vector<1x16x4xf32> -> vector<1x16x4xf32>
    "tpu.trace_stop"() : () -> ()
    %50 = vector.extract_strided_slice %9 {offsets = [0, 4], sizes = [16, 4], strides = [1, 1]} : vector<16x32xbf16> to vector<16x4xbf16>
    %51 = vector.shape_cast %50 : vector<16x4xbf16> to vector<1x16x4xbf16>
    %52 = vector.extract_strided_slice %14 {offsets = [0, 4], sizes = [16, 4], strides = [1, 1]} : vector<16x32xbf16> to vector<16x4xbf16>
    %53 = vector.shape_cast %52 : vector<16x4xbf16> to vector<1x16x4xbf16>
    %54 = vector.extract_strided_slice %11 {offsets = [0, 4], sizes = [16, 4], strides = [1, 1]} : vector<16x32xbf16> to vector<16x4xbf16>
    %55 = vector.shape_cast %54 : vector<16x4xbf16> to vector<1x16x4xbf16>
    %56 = vector.extract_strided_slice %13 {offsets = [0, 4], sizes = [16, 4], strides = [1, 1]} : vector<16x32xbf16> to vector<16x4xbf16>
    %57 = vector.shape_cast %56 : vector<16x4xbf16> to vector<1x16x4xbf16>
    "tpu.trace_start"() <{level = 10 : i32, message = "bnd,bmd->bnm"}> : () -> ()
    %cst_18 = arith.constant dense<0.000000e+00> : vector<1x16x16xf32>
    %58 = tpu.matmul %51, %53, %cst_18 {dimension_numbers = #tpu.dot_dimension_numbers<[2], [2], [1], [1], [0, 0, 0, 1, 1, 1], [0], [0]>} : vector<1x16x4xbf16>, vector<1x16x4xbf16>, vector<1x16x16xf32> -> vector<1x16x16xf32>
    %cst_19 = arith.constant dense<0.000000e+00> : vector<1x16x16xf32>
    %59 = tpu.matmul %53, %55, %cst_19 {dimension_numbers = #tpu.dot_dimension_numbers<[2], [2], [1], [1], [0, 0, 0, 1, 1, 1], [0], [0]>} : vector<1x16x4xbf16>, vector<1x16x4xbf16>, vector<1x16x16xf32> -> vector<1x16x16xf32>
    "tpu.trace_stop"() : () -> ()
    %cst_20 = arith.constant dense<0xFF800000> : vector<1x16xf32>
    %60 = vector.multi_reduction <maximumf>, %58, %cst_20 [2] : vector<1x16x16xf32> to vector<1x16xf32>
    %61 = vector.shape_cast %60 : vector<1x16xf32> to vector<1x16x1xf32>
    %62 = vector.broadcast %61 : vector<1x16x1xf32> to vector<1x16x16xf32>
    %63 = arith.subf %58, %62 : vector<1x16x16xf32>
    %64 = math.exp %63 : vector<1x16x16xf32>
    %cst_21 = arith.constant dense<0.000000e+00> : vector<1x16xf32>
    %65 = vector.multi_reduction <add>, %64, %cst_21 [2] : vector<1x16x16xf32> to vector<1x16xf32>
    %66 = vector.shape_cast %65 : vector<1x16xf32> to vector<1x16x1xf32>
    %67 = tpu.reciprocal %66 {approx = true} : vector<1x16x1xf32> -> vector<1x16x1xf32>
    %68 = vector.broadcast %67 : vector<1x16x1xf32> to vector<1x16x16xf32>
    %69 = arith.mulf %64, %68 : vector<1x16x16xf32>
    %70 = arith.truncf %69 : vector<1x16x16xf32> to vector<1x16x16xbf16>
    %cst_22 = arith.constant dense<0xFF800000> : vector<1x16xf32>
    %71 = vector.multi_reduction <maximumf>, %59, %cst_22 [2] : vector<1x16x16xf32> to vector<1x16xf32>
    %72 = vector.shape_cast %71 : vector<1x16xf32> to vector<1x16x1xf32>
    %73 = vector.broadcast %72 : vector<1x16x1xf32> to vector<1x16x16xf32>
    %74 = arith.subf %59, %73 : vector<1x16x16xf32>
    %75 = math.exp %74 : vector<1x16x16xf32>
    %cst_23 = arith.constant dense<0.000000e+00> : vector<1x16xf32>
    %76 = vector.multi_reduction <add>, %75, %cst_23 [2] : vector<1x16x16xf32> to vector<1x16xf32>
    %77 = vector.shape_cast %76 : vector<1x16xf32> to vector<1x16x1xf32>
    %78 = tpu.reciprocal %77 {approx = true} : vector<1x16x1xf32> -> vector<1x16x1xf32>
    %79 = vector.broadcast %78 : vector<1x16x1xf32> to vector<1x16x16xf32>
    %80 = arith.mulf %75, %79 : vector<1x16x16xf32>
    %81 = arith.truncf %80 : vector<1x16x16xf32> to vector<1x16x16xbf16>
    "tpu.trace_start"() <{level = 10 : i32, message = "bnm,bmd->bnd"}> : () -> ()
    %cst_24 = arith.constant dense<0.000000e+00> : vector<1x16x4xf32>
    %82 = tpu.matmul %81, %57, %cst_24 {dimension_numbers = #tpu.dot_dimension_numbers<[2], [1], [1], [2], [0, 0, 0, 1, 1, 2], [0], [0]>} : vector<1x16x16xbf16>, vector<1x16x4xbf16>, vector<1x16x4xf32> -> vector<1x16x4xf32>
    "tpu.trace_stop"() : () -> ()
    %83 = arith.truncf %82 : vector<1x16x4xf32> to vector<1x16x4xbf16>
    "tpu.trace_start"() <{level = 10 : i32, message = "bnm,bmd->bnd"}> : () -> ()
    %cst_25 = arith.constant dense<0.000000e+00> : vector<1x16x4xf32>
    %84 = tpu.matmul %70, %83, %cst_25 {dimension_numbers = #tpu.dot_dimension_numbers<[2], [1], [1], [2], [0, 0, 0, 1, 1, 2], [0], [0]>} : vector<1x16x16xbf16>, vector<1x16x4xbf16>, vector<1x16x4xf32> -> vector<1x16x4xf32>
    "tpu.trace_stop"() : () -> ()
    %85 = vector.extract_strided_slice %9 {offsets = [0, 8], sizes = [16, 4], strides = [1, 1]} : vector<16x32xbf16> to vector<16x4xbf16>
    %86 = vector.shape_cast %85 : vector<16x4xbf16> to vector<1x16x4xbf16>
    %87 = vector.extract_strided_slice %14 {offsets = [0, 8], sizes = [16, 4], strides = [1, 1]} : vector<16x32xbf16> to vector<16x4xbf16>
    %88 = vector.shape_cast %87 : vector<16x4xbf16> to vector<1x16x4xbf16>
    %89 = vector.extract_strided_slice %11 {offsets = [0, 8], sizes = [16, 4], strides = [1, 1]} : vector<16x32xbf16> to vector<16x4xbf16>
    %90 = vector.shape_cast %89 : vector<16x4xbf16> to vector<1x16x4xbf16>
    %91 = vector.extract_strided_slice %13 {offsets = [0, 8], sizes = [16, 4], strides = [1, 1]} : vector<16x32xbf16> to vector<16x4xbf16>
    %92 = vector.shape_cast %91 : vector<16x4xbf16> to vector<1x16x4xbf16>
    "tpu.trace_start"() <{level = 10 : i32, message = "bnd,bmd->bnm"}> : () -> ()
    %cst_26 = arith.constant dense<0.000000e+00> : vector<1x16x16xf32>
    %93 = tpu.matmul %86, %88, %cst_26 {dimension_numbers = #tpu.dot_dimension_numbers<[2], [2], [1], [1], [0, 0, 0, 1, 1, 1], [0], [0]>} : vector<1x16x4xbf16>, vector<1x16x4xbf16>, vector<1x16x16xf32> -> vector<1x16x16xf32>
    %cst_27 = arith.constant dense<0.000000e+00> : vector<1x16x16xf32>
    %94 = tpu.matmul %88, %90, %cst_27 {dimension_numbers = #tpu.dot_dimension_numbers<[2], [2], [1], [1], [0, 0, 0, 1, 1, 1], [0], [0]>} : vector<1x16x4xbf16>, vector<1x16x4xbf16>, vector<1x16x16xf32> -> vector<1x16x16xf32>
    "tpu.trace_stop"() : () -> ()
    %cst_28 = arith.constant dense<0xFF800000> : vector<1x16xf32>
    %95 = vector.multi_reduction <maximumf>, %93, %cst_28 [2] : vector<1x16x16xf32> to vector<1x16xf32>
    %96 = vector.shape_cast %95 : vector<1x16xf32> to vector<1x16x1xf32>
    %97 = vector.broadcast %96 : vector<1x16x1xf32> to vector<1x16x16xf32>
    %98 = arith.subf %93, %97 : vector<1x16x16xf32>
    %99 = math.exp %98 : vector<1x16x16xf32>
    %cst_29 = arith.constant dense<0.000000e+00> : vector<1x16xf32>
    %100 = vector.multi_reduction <add>, %99, %cst_29 [2] : vector<1x16x16xf32> to vector<1x16xf32>
    %101 = vector.shape_cast %100 : vector<1x16xf32> to vector<1x16x1xf32>
    %102 = tpu.reciprocal %101 {approx = true} : vector<1x16x1xf32> -> vector<1x16x1xf32>
    %103 = vector.broadcast %102 : vector<1x16x1xf32> to vector<1x16x16xf32>
    %104 = arith.mulf %99, %103 : vector<1x16x16xf32>
    %105 = arith.truncf %104 : vector<1x16x16xf32> to vector<1x16x16xbf16>
    %cst_30 = arith.constant dense<0xFF800000> : vector<1x16xf32>
    %106 = vector.multi_reduction <maximumf>, %94, %cst_30 [2] : vector<1x16x16xf32> to vector<1x16xf32>
    %107 = vector.shape_cast %106 : vector<1x16xf32> to vector<1x16x1xf32>
    %108 = vector.broadcast %107 : vector<1x16x1xf32> to vector<1x16x16xf32>
    %109 = arith.subf %94, %108 : vector<1x16x16xf32>
    %110 = math.exp %109 : vector<1x16x16xf32>
    %cst_31 = arith.constant dense<0.000000e+00> : vector<1x16xf32>
    %111 = vector.multi_reduction <add>, %110, %cst_31 [2] : vector<1x16x16xf32> to vector<1x16xf32>
    %112 = vector.shape_cast %111 : vector<1x16xf32> to vector<1x16x1xf32>
    %113 = tpu.reciprocal %112 {approx = true} : vector<1x16x1xf32> -> vector<1x16x1xf32>
    %114 = vector.broadcast %113 : vector<1x16x1xf32> to vector<1x16x16xf32>
    %115 = arith.mulf %110, %114 : vector<1x16x16xf32>
    %116 = arith.truncf %115 : vector<1x16x16xf32> to vector<1x16x16xbf16>
    "tpu.trace_start"() <{level = 10 : i32, message = "bnm,bmd->bnd"}> : () -> ()
    %cst_32 = arith.constant dense<0.000000e+00> : vector<1x16x4xf32>
    %117 = tpu.matmul %116, %92, %cst_32 {dimension_numbers = #tpu.dot_dimension_numbers<[2], [1], [1], [2], [0, 0, 0, 1, 1, 2], [0], [0]>} : vector<1x16x16xbf16>, vector<1x16x4xbf16>, vector<1x16x4xf32> -> vector<1x16x4xf32>
    "tpu.trace_stop"() : () -> ()
    %118 = arith.truncf %117 : vector<1x16x4xf32> to vector<1x16x4xbf16>
    "tpu.trace_start"() <{level = 10 : i32, message = "bnm,bmd->bnd"}> : () -> ()
    %cst_33 = arith.constant dense<0.000000e+00> : vector<1x16x4xf32>
    %119 = tpu.matmul %105, %118, %cst_33 {dimension_numbers = #tpu.dot_dimension_numbers<[2], [1], [1], [2], [0, 0, 0, 1, 1, 2], [0], [0]>} : vector<1x16x16xbf16>, vector<1x16x4xbf16>, vector<1x16x4xf32> -> vector<1x16x4xf32>
    "tpu.trace_stop"() : () -> ()
    %120 = vector.extract_strided_slice %9 {offsets = [0, 12], sizes = [16, 4], strides = [1, 1]} : vector<16x32xbf16> to vector<16x4xbf16>
    %121 = vector.shape_cast %120 : vector<16x4xbf16> to vector<1x16x4xbf16>
    %122 = vector.extract_strided_slice %14 {offsets = [0, 12], sizes = [16, 4], strides = [1, 1]} : vector<16x32xbf16> to vector<16x4xbf16>
    %123 = vector.shape_cast %122 : vector<16x4xbf16> to vector<1x16x4xbf16>
    %124 = vector.extract_strided_slice %11 {offsets = [0, 12], sizes = [16, 4], strides = [1, 1]} : vector<16x32xbf16> to vector<16x4xbf16>
    %125 = vector.shape_cast %124 : vector<16x4xbf16> to vector<1x16x4xbf16>
    %126 = vector.extract_strided_slice %13 {offsets = [0, 12], sizes = [16, 4], strides = [1, 1]} : vector<16x32xbf16> to vector<16x4xbf16>
    %127 = vector.shape_cast %126 : vector<16x4xbf16> to vector<1x16x4xbf16>
    "tpu.trace_start"() <{level = 10 : i32, message = "bnd,bmd->bnm"}> : () -> ()
    %cst_34 = arith.constant dense<0.000000e+00> : vector<1x16x16xf32>
    %128 = tpu.matmul %121, %123, %cst_34 {dimension_numbers = #tpu.dot_dimension_numbers<[2], [2], [1], [1], [0, 0, 0, 1, 1, 1], [0], [0]>} : vector<1x16x4xbf16>, vector<1x16x4xbf16>, vector<1x16x16xf32> -> vector<1x16x16xf32>
    %cst_35 = arith.constant dense<0.000000e+00> : vector<1x16x16xf32>
    %129 = tpu.matmul %123, %125, %cst_35 {dimension_numbers = #tpu.dot_dimension_numbers<[2], [2], [1], [1], [0, 0, 0, 1, 1, 1], [0], [0]>} : vector<1x16x4xbf16>, vector<1x16x4xbf16>, vector<1x16x16xf32> -> vector<1x16x16xf32>
    "tpu.trace_stop"() : () -> ()
    %cst_36 = arith.constant dense<0xFF800000> : vector<1x16xf32>
    %130 = vector.multi_reduction <maximumf>, %128, %cst_36 [2] : vector<1x16x16xf32> to vector<1x16xf32>
    %131 = vector.shape_cast %130 : vector<1x16xf32> to vector<1x16x1xf32>
    %132 = vector.broadcast %131 : vector<1x16x1xf32> to vector<1x16x16xf32>
    %133 = arith.subf %128, %132 : vector<1x16x16xf32>
    %134 = math.exp %133 : vector<1x16x16xf32>
    %cst_37 = arith.constant dense<0.000000e+00> : vector<1x16xf32>
    %135 = vector.multi_reduction <add>, %134, %cst_37 [2] : vector<1x16x16xf32> to vector<1x16xf32>
    %136 = vector.shape_cast %135 : vector<1x16xf32> to vector<1x16x1xf32>
    %137 = tpu.reciprocal %136 {approx = true} : vector<1x16x1xf32> -> vector<1x16x1xf32>
    %138 = vector.broadcast %137 : vector<1x16x1xf32> to vector<1x16x16xf32>
    %139 = arith.mulf %134, %138 : vector<1x16x16xf32>
    %140 = arith.truncf %139 : vector<1x16x16xf32> to vector<1x16x16xbf16>
    %cst_38 = arith.constant dense<0xFF800000> : vector<1x16xf32>
    %141 = vector.multi_reduction <maximumf>, %129, %cst_38 [2] : vector<1x16x16xf32> to vector<1x16xf32>
    %142 = vector.shape_cast %141 : vector<1x16xf32> to vector<1x16x1xf32>
    %143 = vector.broadcast %142 : vector<1x16x1xf32> to vector<1x16x16xf32>
    %144 = arith.subf %129, %143 : vector<1x16x16xf32>
    %145 = math.exp %144 : vector<1x16x16xf32>
    %cst_39 = arith.constant dense<0.000000e+00> : vector<1x16xf32>
    %146 = vector.multi_reduction <add>, %145, %cst_39 [2] : vector<1x16x16xf32> to vector<1x16xf32>
    %147 = vector.shape_cast %146 : vector<1x16xf32> to vector<1x16x1xf32>
    %148 = tpu.reciprocal %147 {approx = true} : vector<1x16x1xf32> -> vector<1x16x1xf32>
    %149 = vector.broadcast %148 : vector<1x16x1xf32> to vector<1x16x16xf32>
    %150 = arith.mulf %145, %149 : vector<1x16x16xf32>
    %151 = arith.truncf %150 : vector<1x16x16xf32> to vector<1x16x16xbf16>
    "tpu.trace_start"() <{level = 10 : i32, message = "bnm,bmd->bnd"}> : () -> ()
    %cst_40 = arith.constant dense<0.000000e+00> : vector<1x16x4xf32>
    %152 = tpu.matmul %151, %127, %cst_40 {dimension_numbers = #tpu.dot_dimension_numbers<[2], [1], [1], [2], [0, 0, 0, 1, 1, 2], [0], [0]>} : vector<1x16x16xbf16>, vector<1x16x4xbf16>, vector<1x16x4xf32> -> vector<1x16x4xf32>
    "tpu.trace_stop"() : () -> ()
    %153 = arith.truncf %152 : vector<1x16x4xf32> to vector<1x16x4xbf16>
    "tpu.trace_start"() <{level = 10 : i32, message = "bnm,bmd->bnd"}> : () -> ()
    %cst_41 = arith.constant dense<0.000000e+00> : vector<1x16x4xf32>
    %154 = tpu.matmul %140, %153, %cst_41 {dimension_numbers = #tpu.dot_dimension_numbers<[2], [1], [1], [2], [0, 0, 0, 1, 1, 2], [0], [0]>} : vector<1x16x16xbf16>, vector<1x16x4xbf16>, vector<1x16x4xf32> -> vector<1x16x4xf32>
    "tpu.trace_stop"() : () -> ()
    %155 = vector.extract_strided_slice %9 {offsets = [0, 16], sizes = [16, 4], strides = [1, 1]} : vector<16x32xbf16> to vector<16x4xbf16>
    %156 = vector.shape_cast %155 : vector<16x4xbf16> to vector<1x16x4xbf16>
    %157 = vector.extract_strided_slice %14 {offsets = [0, 16], sizes = [16, 4], strides = [1, 1]} : vector<16x32xbf16> to vector<16x4xbf16>
    %158 = vector.shape_cast %157 : vector<16x4xbf16> to vector<1x16x4xbf16>
    %159 = vector.extract_strided_slice %11 {offsets = [0, 16], sizes = [16, 4], strides = [1, 1]} : vector<16x32xbf16> to vector<16x4xbf16>
    %160 = vector.shape_cast %159 : vector<16x4xbf16> to vector<1x16x4xbf16>
    %161 = vector.extract_strided_slice %13 {offsets = [0, 16], sizes = [16, 4], strides = [1, 1]} : vector<16x32xbf16> to vector<16x4xbf16>
    %162 = vector.shape_cast %161 : vector<16x4xbf16> to vector<1x16x4xbf16>
    "tpu.trace_start"() <{level = 10 : i32, message = "bnd,bmd->bnm"}> : () -> ()
    %cst_42 = arith.constant dense<0.000000e+00> : vector<1x16x16xf32>
    %163 = tpu.matmul %156, %158, %cst_42 {dimension_numbers = #tpu.dot_dimension_numbers<[2], [2], [1], [1], [0, 0, 0, 1, 1, 1], [0], [0]>} : vector<1x16x4xbf16>, vector<1x16x4xbf16>, vector<1x16x16xf32> -> vector<1x16x16xf32>
    %cst_43 = arith.constant dense<0.000000e+00> : vector<1x16x16xf32>
    %164 = tpu.matmul %158, %160, %cst_43 {dimension_numbers = #tpu.dot_dimension_numbers<[2], [2], [1], [1], [0, 0, 0, 1, 1, 1], [0], [0]>} : vector<1x16x4xbf16>, vector<1x16x4xbf16>, vector<1x16x16xf32> -> vector<1x16x16xf32>
    "tpu.trace_stop"() : () -> ()
    %cst_44 = arith.constant dense<0xFF800000> : vector<1x16xf32>
    %165 = vector.multi_reduction <maximumf>, %163, %cst_44 [2] : vector<1x16x16xf32> to vector<1x16xf32>
    %166 = vector.shape_cast %165 : vector<1x16xf32> to vector<1x16x1xf32>
    %167 = vector.broadcast %166 : vector<1x16x1xf32> to vector<1x16x16xf32>
    %168 = arith.subf %163, %167 : vector<1x16x16xf32>
    %169 = math.exp %168 : vector<1x16x16xf32>
    %cst_45 = arith.constant dense<0.000000e+00> : vector<1x16xf32>
    %170 = vector.multi_reduction <add>, %169, %cst_45 [2] : vector<1x16x16xf32> to vector<1x16xf32>
    %171 = vector.shape_cast %170 : vector<1x16xf32> to vector<1x16x1xf32>
    %172 = tpu.reciprocal %171 {approx = true} : vector<1x16x1xf32> -> vector<1x16x1xf32>
    %173 = vector.broadcast %172 : vector<1x16x1xf32> to vector<1x16x16xf32>
    %174 = arith.mulf %169, %173 : vector<1x16x16xf32>
    %175 = arith.truncf %174 : vector<1x16x16xf32> to vector<1x16x16xbf16>
    %cst_46 = arith.constant dense<0xFF800000> : vector<1x16xf32>
    %176 = vector.multi_reduction <maximumf>, %164, %cst_46 [2] : vector<1x16x16xf32> to vector<1x16xf32>
    %177 = vector.shape_cast %176 : vector<1x16xf32> to vector<1x16x1xf32>
    %178 = vector.broadcast %177 : vector<1x16x1xf32> to vector<1x16x16xf32>
    %179 = arith.subf %164, %178 : vector<1x16x16xf32>
    %180 = math.exp %179 : vector<1x16x16xf32>
    %cst_47 = arith.constant dense<0.000000e+00> : vector<1x16xf32>
    %181 = vector.multi_reduction <add>, %180, %cst_47 [2] : vector<1x16x16xf32> to vector<1x16xf32>
    %182 = vector.shape_cast %181 : vector<1x16xf32> to vector<1x16x1xf32>
    %183 = tpu.reciprocal %182 {approx = true} : vector<1x16x1xf32> -> vector<1x16x1xf32>
    %184 = vector.broadcast %183 : vector<1x16x1xf32> to vector<1x16x16xf32>
    %185 = arith.mulf %180, %184 : vector<1x16x16xf32>
    %186 = arith.truncf %185 : vector<1x16x16xf32> to vector<1x16x16xbf16>
    "tpu.trace_start"() <{level = 10 : i32, message = "bnm,bmd->bnd"}> : () -> ()
    %cst_48 = arith.constant dense<0.000000e+00> : vector<1x16x4xf32>
    %187 = tpu.matmul %186, %162, %cst_48 {dimension_numbers = #tpu.dot_dimension_numbers<[2], [1], [1], [2], [0, 0, 0, 1, 1, 2], [0], [0]>} : vector<1x16x16xbf16>, vector<1x16x4xbf16>, vector<1x16x4xf32> -> vector<1x16x4xf32>
    "tpu.trace_stop"() : () -> ()
    %188 = arith.truncf %187 : vector<1x16x4xf32> to vector<1x16x4xbf16>
    "tpu.trace_start"() <{level = 10 : i32, message = "bnm,bmd->bnd"}> : () -> ()
    %cst_49 = arith.constant dense<0.000000e+00> : vector<1x16x4xf32>
    %189 = tpu.matmul %175, %188, %cst_49 {dimension_numbers = #tpu.dot_dimension_numbers<[2], [1], [1], [2], [0, 0, 0, 1, 1, 2], [0], [0]>} : vector<1x16x16xbf16>, vector<1x16x4xbf16>, vector<1x16x4xf32> -> vector<1x16x4xf32>
    "tpu.trace_stop"() : () -> ()
    %190 = vector.extract_strided_slice %9 {offsets = [0, 20], sizes = [16, 4], strides = [1, 1]} : vector<16x32xbf16> to vector<16x4xbf16>
    %191 = vector.shape_cast %190 : vector<16x4xbf16> to vector<1x16x4xbf16>
    %192 = vector.extract_strided_slice %14 {offsets = [0, 20], sizes = [16, 4], strides = [1, 1]} : vector<16x32xbf16> to vector<16x4xbf16>
    %193 = vector.shape_cast %192 : vector<16x4xbf16> to vector<1x16x4xbf16>
    %194 = vector.extract_strided_slice %11 {offsets = [0, 20], sizes = [16, 4], strides = [1, 1]} : vector<16x32xbf16> to vector<16x4xbf16>
    %195 = vector.shape_cast %194 : vector<16x4xbf16> to vector<1x16x4xbf16>
    %196 = vector.extract_strided_slice %13 {offsets = [0, 20], sizes = [16, 4], strides = [1, 1]} : vector<16x32xbf16> to vector<16x4xbf16>
    %197 = vector.shape_cast %196 : vector<16x4xbf16> to vector<1x16x4xbf16>
    "tpu.trace_start"() <{level = 10 : i32, message = "bnd,bmd->bnm"}> : () -> ()
    %cst_50 = arith.constant dense<0.000000e+00> : vector<1x16x16xf32>
    %198 = tpu.matmul %191, %193, %cst_50 {dimension_numbers = #tpu.dot_dimension_numbers<[2], [2], [1], [1], [0, 0, 0, 1, 1, 1], [0], [0]>} : vector<1x16x4xbf16>, vector<1x16x4xbf16>, vector<1x16x16xf32> -> vector<1x16x16xf32>
    %cst_51 = arith.constant dense<0.000000e+00> : vector<1x16x16xf32>
    %199 = tpu.matmul %193, %195, %cst_51 {dimension_numbers = #tpu.dot_dimension_numbers<[2], [2], [1], [1], [0, 0, 0, 1, 1, 1], [0], [0]>} : vector<1x16x4xbf16>, vector<1x16x4xbf16>, vector<1x16x16xf32> -> vector<1x16x16xf32>
    "tpu.trace_stop"() : () -> ()
    %cst_52 = arith.constant dense<0xFF800000> : vector<1x16xf32>
    %200 = vector.multi_reduction <maximumf>, %198, %cst_52 [2] : vector<1x16x16xf32> to vector<1x16xf32>
    %201 = vector.shape_cast %200 : vector<1x16xf32> to vector<1x16x1xf32>
    %202 = vector.broadcast %201 : vector<1x16x1xf32> to vector<1x16x16xf32>
    %203 = arith.subf %198, %202 : vector<1x16x16xf32>
    %204 = math.exp %203 : vector<1x16x16xf32>
    %cst_53 = arith.constant dense<0.000000e+00> : vector<1x16xf32>
    %205 = vector.multi_reduction <add>, %204, %cst_53 [2] : vector<1x16x16xf32> to vector<1x16xf32>
    %206 = vector.shape_cast %205 : vector<1x16xf32> to vector<1x16x1xf32>
    %207 = tpu.reciprocal %206 {approx = true} : vector<1x16x1xf32> -> vector<1x16x1xf32>
    %208 = vector.broadcast %207 : vector<1x16x1xf32> to vector<1x16x16xf32>
    %209 = arith.mulf %204, %208 : vector<1x16x16xf32>
    %210 = arith.truncf %209 : vector<1x16x16xf32> to vector<1x16x16xbf16>
    %cst_54 = arith.constant dense<0xFF800000> : vector<1x16xf32>
    %211 = vector.multi_reduction <maximumf>, %199, %cst_54 [2] : vector<1x16x16xf32> to vector<1x16xf32>
    %212 = vector.shape_cast %211 : vector<1x16xf32> to vector<1x16x1xf32>
    %213 = vector.broadcast %212 : vector<1x16x1xf32> to vector<1x16x16xf32>
    %214 = arith.subf %199, %213 : vector<1x16x16xf32>
    %215 = math.exp %214 : vector<1x16x16xf32>
    %cst_55 = arith.constant dense<0.000000e+00> : vector<1x16xf32>
    %216 = vector.multi_reduction <add>, %215, %cst_55 [2] : vector<1x16x16xf32> to vector<1x16xf32>
    %217 = vector.shape_cast %216 : vector<1x16xf32> to vector<1x16x1xf32>
    %218 = tpu.reciprocal %217 {approx = true} : vector<1x16x1xf32> -> vector<1x16x1xf32>
    %219 = vector.broadcast %218 : vector<1x16x1xf32> to vector<1x16x16xf32>
    %220 = arith.mulf %215, %219 : vector<1x16x16xf32>
    %221 = arith.truncf %220 : vector<1x16x16xf32> to vector<1x16x16xbf16>
    "tpu.trace_start"() <{level = 10 : i32, message = "bnm,bmd->bnd"}> : () -> ()
    %cst_56 = arith.constant dense<0.000000e+00> : vector<1x16x4xf32>
    %222 = tpu.matmul %221, %197, %cst_56 {dimension_numbers = #tpu.dot_dimension_numbers<[2], [1], [1], [2], [0, 0, 0, 1, 1, 2], [0], [0]>} : vector<1x16x16xbf16>, vector<1x16x4xbf16>, vector<1x16x4xf32> -> vector<1x16x4xf32>
    "tpu.trace_stop"() : () -> ()
    %223 = arith.truncf %222 : vector<1x16x4xf32> to vector<1x16x4xbf16>
    "tpu.trace_start"() <{level = 10 : i32, message = "bnm,bmd->bnd"}> : () -> ()
    %cst_57 = arith.constant dense<0.000000e+00> : vector<1x16x4xf32>
    %224 = tpu.matmul %210, %223, %cst_57 {dimension_numbers = #tpu.dot_dimension_numbers<[2], [1], [1], [2], [0, 0, 0, 1, 1, 2], [0], [0]>} : vector<1x16x16xbf16>, vector<1x16x4xbf16>, vector<1x16x4xf32> -> vector<1x16x4xf32>
    "tpu.trace_stop"() : () -> ()
    %225 = vector.extract_strided_slice %9 {offsets = [0, 24], sizes = [16, 4], strides = [1, 1]} : vector<16x32xbf16> to vector<16x4xbf16>
    %226 = vector.shape_cast %225 : vector<16x4xbf16> to vector<1x16x4xbf16>
    %227 = vector.extract_strided_slice %14 {offsets = [0, 24], sizes = [16, 4], strides = [1, 1]} : vector<16x32xbf16> to vector<16x4xbf16>
    %228 = vector.shape_cast %227 : vector<16x4xbf16> to vector<1x16x4xbf16>
    %229 = vector.extract_strided_slice %11 {offsets = [0, 24], sizes = [16, 4], strides = [1, 1]} : vector<16x32xbf16> to vector<16x4xbf16>
    %230 = vector.shape_cast %229 : vector<16x4xbf16> to vector<1x16x4xbf16>
    %231 = vector.extract_strided_slice %13 {offsets = [0, 24], sizes = [16, 4], strides = [1, 1]} : vector<16x32xbf16> to vector<16x4xbf16>
    %232 = vector.shape_cast %231 : vector<16x4xbf16> to vector<1x16x4xbf16>
    "tpu.trace_start"() <{level = 10 : i32, message = "bnd,bmd->bnm"}> : () -> ()
    %cst_58 = arith.constant dense<0.000000e+00> : vector<1x16x16xf32>
    %233 = tpu.matmul %226, %228, %cst_58 {dimension_numbers = #tpu.dot_dimension_numbers<[2], [2], [1], [1], [0, 0, 0, 1, 1, 1], [0], [0]>} : vector<1x16x4xbf16>, vector<1x16x4xbf16>, vector<1x16x16xf32> -> vector<1x16x16xf32>
    %cst_59 = arith.constant dense<0.000000e+00> : vector<1x16x16xf32>
    %234 = tpu.matmul %228, %230, %cst_59 {dimension_numbers = #tpu.dot_dimension_numbers<[2], [2], [1], [1], [0, 0, 0, 1, 1, 1], [0], [0]>} : vector<1x16x4xbf16>, vector<1x16x4xbf16>, vector<1x16x16xf32> -> vector<1x16x16xf32>
    "tpu.trace_stop"() : () -> ()
    %cst_60 = arith.constant dense<0xFF800000> : vector<1x16xf32>
    %235 = vector.multi_reduction <maximumf>, %233, %cst_60 [2] : vector<1x16x16xf32> to vector<1x16xf32>
    %236 = vector.shape_cast %235 : vector<1x16xf32> to vector<1x16x1xf32>
    %237 = vector.broadcast %236 : vector<1x16x1xf32> to vector<1x16x16xf32>
    %238 = arith.subf %233, %237 : vector<1x16x16xf32>
    %239 = math.exp %238 : vector<1x16x16xf32>
    %cst_61 = arith.constant dense<0.000000e+00> : vector<1x16xf32>
    %240 = vector.multi_reduction <add>, %239, %cst_61 [2] : vector<1x16x16xf32> to vector<1x16xf32>
    %241 = vector.shape_cast %240 : vector<1x16xf32> to vector<1x16x1xf32>
    %242 = tpu.reciprocal %241 {approx = true} : vector<1x16x1xf32> -> vector<1x16x1xf32>
    %243 = vector.broadcast %242 : vector<1x16x1xf32> to vector<1x16x16xf32>
    %244 = arith.mulf %239, %243 : vector<1x16x16xf32>
    %245 = arith.truncf %244 : vector<1x16x16xf32> to vector<1x16x16xbf16>
    %cst_62 = arith.constant dense<0xFF800000> : vector<1x16xf32>
    %246 = vector.multi_reduction <maximumf>, %234, %cst_62 [2] : vector<1x16x16xf32> to vector<1x16xf32>
    %247 = vector.shape_cast %246 : vector<1x16xf32> to vector<1x16x1xf32>
    %248 = vector.broadcast %247 : vector<1x16x1xf32> to vector<1x16x16xf32>
    %249 = arith.subf %234, %248 : vector<1x16x16xf32>
    %250 = math.exp %249 : vector<1x16x16xf32>
    %cst_63 = arith.constant dense<0.000000e+00> : vector<1x16xf32>
    %251 = vector.multi_reduction <add>, %250, %cst_63 [2] : vector<1x16x16xf32> to vector<1x16xf32>
    %252 = vector.shape_cast %251 : vector<1x16xf32> to vector<1x16x1xf32>
    %253 = tpu.reciprocal %252 {approx = true} : vector<1x16x1xf32> -> vector<1x16x1xf32>
    %254 = vector.broadcast %253 : vector<1x16x1xf32> to vector<1x16x16xf32>
    %255 = arith.mulf %250, %254 : vector<1x16x16xf32>
    %256 = arith.truncf %255 : vector<1x16x16xf32> to vector<1x16x16xbf16>
    "tpu.trace_start"() <{level = 10 : i32, message = "bnm,bmd->bnd"}> : () -> ()
    %cst_64 = arith.constant dense<0.000000e+00> : vector<1x16x4xf32>
    %257 = tpu.matmul %256, %232, %cst_64 {dimension_numbers = #tpu.dot_dimension_numbers<[2], [1], [1], [2], [0, 0, 0, 1, 1, 2], [0], [0]>} : vector<1x16x16xbf16>, vector<1x16x4xbf16>, vector<1x16x4xf32> -> vector<1x16x4xf32>
    "tpu.trace_stop"() : () -> ()
    %258 = arith.truncf %257 : vector<1x16x4xf32> to vector<1x16x4xbf16>
    "tpu.trace_start"() <{level = 10 : i32, message = "bnm,bmd->bnd"}> : () -> ()
    %cst_65 = arith.constant dense<0.000000e+00> : vector<1x16x4xf32>
    %259 = tpu.matmul %245, %258, %cst_65 {dimension_numbers = #tpu.dot_dimension_numbers<[2], [1], [1], [2], [0, 0, 0, 1, 1, 2], [0], [0]>} : vector<1x16x16xbf16>, vector<1x16x4xbf16>, vector<1x16x4xf32> -> vector<1x16x4xf32>
    "tpu.trace_stop"() : () -> ()
    %260 = vector.extract_strided_slice %9 {offsets = [0, 28], sizes = [16, 4], strides = [1, 1]} : vector<16x32xbf16> to vector<16x4xbf16>
    %261 = vector.shape_cast %260 : vector<16x4xbf16> to vector<1x16x4xbf16>
    %262 = vector.extract_strided_slice %14 {offsets = [0, 28], sizes = [16, 4], strides = [1, 1]} : vector<16x32xbf16> to vector<16x4xbf16>
    %263 = vector.shape_cast %262 : vector<16x4xbf16> to vector<1x16x4xbf16>
    %264 = vector.extract_strided_slice %11 {offsets = [0, 28], sizes = [16, 4], strides = [1, 1]} : vector<16x32xbf16> to vector<16x4xbf16>
    %265 = vector.shape_cast %264 : vector<16x4xbf16> to vector<1x16x4xbf16>
    %266 = vector.extract_strided_slice %13 {offsets = [0, 28], sizes = [16, 4], strides = [1, 1]} : vector<16x32xbf16> to vector<16x4xbf16>
    %267 = vector.shape_cast %266 : vector<16x4xbf16> to vector<1x16x4xbf16>
    "tpu.trace_start"() <{level = 10 : i32, message = "bnd,bmd->bnm"}> : () -> ()
    %cst_66 = arith.constant dense<0.000000e+00> : vector<1x16x16xf32>
    %268 = tpu.matmul %261, %263, %cst_66 {dimension_numbers = #tpu.dot_dimension_numbers<[2], [2], [1], [1], [0, 0, 0, 1, 1, 1], [0], [0]>} : vector<1x16x4xbf16>, vector<1x16x4xbf16>, vector<1x16x16xf32> -> vector<1x16x16xf32>
    %cst_67 = arith.constant dense<0.000000e+00> : vector<1x16x16xf32>
    %269 = tpu.matmul %263, %265, %cst_67 {dimension_numbers = #tpu.dot_dimension_numbers<[2], [2], [1], [1], [0, 0, 0, 1, 1, 1], [0], [0]>} : vector<1x16x4xbf16>, vector<1x16x4xbf16>, vector<1x16x16xf32> -> vector<1x16x16xf32>
    "tpu.trace_stop"() : () -> ()
    %cst_68 = arith.constant dense<0xFF800000> : vector<1x16xf32>
    %270 = vector.multi_reduction <maximumf>, %268, %cst_68 [2] : vector<1x16x16xf32> to vector<1x16xf32>
    %271 = vector.shape_cast %270 : vector<1x16xf32> to vector<1x16x1xf32>
    %272 = vector.broadcast %271 : vector<1x16x1xf32> to vector<1x16x16xf32>
    %273 = arith.subf %268, %272 : vector<1x16x16xf32>
    %274 = math.exp %273 : vector<1x16x16xf32>
    %cst_69 = arith.constant dense<0.000000e+00> : vector<1x16xf32>
    %275 = vector.multi_reduction <add>, %274, %cst_69 [2] : vector<1x16x16xf32> to vector<1x16xf32>
    %276 = vector.shape_cast %275 : vector<1x16xf32> to vector<1x16x1xf32>
    %277 = tpu.reciprocal %276 {approx = true} : vector<1x16x1xf32> -> vector<1x16x1xf32>
    %278 = vector.broadcast %277 : vector<1x16x1xf32> to vector<1x16x16xf32>
    %279 = arith.mulf %274, %278 : vector<1x16x16xf32>
    %280 = arith.truncf %279 : vector<1x16x16xf32> to vector<1x16x16xbf16>
    %cst_70 = arith.constant dense<0xFF800000> : vector<1x16xf32>
    %281 = vector.multi_reduction <maximumf>, %269, %cst_70 [2] : vector<1x16x16xf32> to vector<1x16xf32>
    %282 = vector.shape_cast %281 : vector<1x16xf32> to vector<1x16x1xf32>
    %283 = vector.broadcast %282 : vector<1x16x1xf32> to vector<1x16x16xf32>
    %284 = arith.subf %269, %283 : vector<1x16x16xf32>
    %285 = math.exp %284 : vector<1x16x16xf32>
    %cst_71 = arith.constant dense<0.000000e+00> : vector<1x16xf32>
    %286 = vector.multi_reduction <add>, %285, %cst_71 [2] : vector<1x16x16xf32> to vector<1x16xf32>
    %287 = vector.shape_cast %286 : vector<1x16xf32> to vector<1x16x1xf32>
    %288 = tpu.reciprocal %287 {approx = true} : vector<1x16x1xf32> -> vector<1x16x1xf32>
    %289 = vector.broadcast %288 : vector<1x16x1xf32> to vector<1x16x16xf32>
    %290 = arith.mulf %285, %289 : vector<1x16x16xf32>
    %291 = arith.truncf %290 : vector<1x16x16xf32> to vector<1x16x16xbf16>
    "tpu.trace_start"() <{level = 10 : i32, message = "bnm,bmd->bnd"}> : () -> ()
    %cst_72 = arith.constant dense<0.000000e+00> : vector<1x16x4xf32>
    %292 = tpu.matmul %291, %267, %cst_72 {dimension_numbers = #tpu.dot_dimension_numbers<[2], [1], [1], [2], [0, 0, 0, 1, 1, 2], [0], [0]>} : vector<1x16x16xbf16>, vector<1x16x4xbf16>, vector<1x16x4xf32> -> vector<1x16x4xf32>
    "tpu.trace_stop"() : () -> ()
    %293 = arith.truncf %292 : vector<1x16x4xf32> to vector<1x16x4xbf16>
    "tpu.trace_start"() <{level = 10 : i32, message = "bnm,bmd->bnd"}> : () -> ()
    %cst_73 = arith.constant dense<0.000000e+00> : vector<1x16x4xf32>
    %294 = tpu.matmul %280, %293, %cst_73 {dimension_numbers = #tpu.dot_dimension_numbers<[2], [1], [1], [2], [0, 0, 0, 1, 1, 2], [0], [0]>} : vector<1x16x16xbf16>, vector<1x16x4xbf16>, vector<1x16x4xf32> -> vector<1x16x4xf32>
    "tpu.trace_stop"() : () -> ()
    %295 = tpu.concatenate %49, %84, %119, %154, %189, %224, %259, %294 in 2 : vector<1x16x4xf32>, vector<1x16x4xf32>, vector<1x16x4xf32>, vector<1x16x4xf32>, vector<1x16x4xf32>, vector<1x16x4xf32>, vector<1x16x4xf32>, vector<1x16x4xf32> -> vector<1x16x32xf32>
    %c0_74 = arith.constant 0 : index
    %c0_75 = arith.constant 0 : index
    %c0_76 = arith.constant 0 : index
    %296 = vector.load %arg5[%c0_74, %c0_75, %c0_76] : memref<1x16x32xf32, #tpu.memory_space<vmem>>, vector<1x16x32xf32>
    tpu.vector_store %arg5[%c0_74, %c0_75, %c0_76], %295 {strides = array<i32>} : memref<1x16x32xf32, #tpu.memory_space<vmem>>, vector<1x16x32xf32>,
    return
  }
  func.func @transform_0(%arg0: i32) -> (i32, i32, i32) {
    %c0_i32 = arith.constant 0 : i32
    %c0_i32_0 = arith.constant 0 : i32
    %c0_i32_1 = arith.constant 0 : i32
    return %arg0, %c0_i32, %c0_i32_0 : i32, i32, i32
  }
  func.func @transform_1(%arg0: i32) -> (i32, i32, i32) {
    %c0_i32 = arith.constant 0 : i32
    %c0_i32_0 = arith.constant 0 : i32
    %c0_i32_1 = arith.constant 0 : i32
    return %arg0, %c0_i32, %c0_i32_0 : i32, i32, i32
  }
  func.func @transform_2(%arg0: i32) -> (i32, i32) {
    %c0_i32 = arith.constant 0 : i32
    %c0_i32_0 = arith.constant 0 : i32
    %c0_i32_1 = arith.constant 0 : i32
    return %c0_i32, %c0_i32_0 : i32, i32
  }
  func.func @transform_3(%arg0: i32) -> (i32, i32) {
    %c0_i32 = arith.constant 0 : i32
    %c0_i32_0 = arith.constant 0 : i32
    %c0_i32_1 = arith.constant 0 : i32
    return %c0_i32, %c0_i32_0 : i32, i32
  }
  func.func @transform_4(%arg0: i32) -> (i32, i32, i32) {
    %c0_i32 = arith.constant 0 : i32
    %c0_i32_0 = arith.constant 0 : i32
    %c0_i32_1 = arith.constant 0 : i32
    return %arg0, %c0_i32, %c0_i32_0 : i32, i32, i32
  }
}

</mosaic_0001>

<bundles_post_ra>
// kernel: tpu_custom_call.1
= control target key start
LH: loop header
LB: loop body
LE: loop exit
PB: predicated region body
PF: predicated region fallthrough
CT: control target
= control target key end

     0   :  { %s3951_s0 = inlined_call_operand.hbm [shape: bf16[2,16,32], index: 0, kind: input, shape index: {}]   ;;  %s3952_s1 = inlined_call_operand.hbm [shape: bf16[2,16,32], index: 1, kind: input, shape index: {}]   ;;  %s3953_s2 = inlined_call_operand.hbm [shape: bf16[32,96], index: 2, kind: input, shape index: {}]   ;;  %s3954_s3 = inlined_call_operand.hbm [shape: bf16[32,32], index: 3, kind: input, shape index: {}]   ;;  %s3955_s4 = inlined_call_operand.hbm [shape: f32[2,16,32], index: 4, kind: output, shape index: {}]  }
   0x1   :  { %3963 = sst [smem:[#allocation16_spill]] %s3951_s0 }
   0x2   :  { %9 = vsyncpa [#allocation3], 0 }
   0x3   :  { %11 = vsyncpa [#allocation3 + $0x1], 0 }
   0x4   :  { %12 = vsyncpa [#allocation6], 0 }
   0x5   :  { %14 = vsyncpa [#allocation6 + $0x1], 0 }
   0x6   :  { %15 = vsyncpa [#allocation9], 0 }
   0x7   :  { %16 = vsyncpa [#allocation4], 0 }
   0x8   :  { %18 = vsyncpa [#allocation4 + $0x1], 0  ;;  %s3354_s15 = smov 0   ;;  %s3356_s16 = smov 0  }
   0x9   :  { %s3358_s17 = smov 0   ;;  %s3360_s18 = smov 0  }
   0xa LB: > { %s3375_s19 = sadd.s32 4294967295, %s3287_s18   ;;  %s2509_s20 = sadd.s32 4294967294, %s3287_s18   ;;  %s3287_s18 = sphi %s3360_s18, %s3985_s18   ;;  %s3283_s17 = sphi %s3358_s17, %s3984_s17   ;;  %s3279_s16 = sphi %s3356_s16, %s3983_s16   ;;  %s3275_s15 = sphi %s3354_s15, %s3982_s15  }
   0xb   : > { %p44_p0 = scmp.ne.s32.totalorder %s3279_s16, %s3275_s15  ;;  %p3956_p1 = scmp.eq.s32.totalorder %s3375_s19, 0 }
   0xc   : > { %p142_p3 = scmp.eq.s32.totalorder %s2509_s20, 1  ;;  %p2510_p5 = scmp.ge.s32.totalorder %s3287_s18, 1 }
   0xd   : > { %p3384_p4 = por %p3956_p1, %p44_p0  ;;  %p149_p7 = scmp.lt.s32.totalorder %s3287_s18, 3 }
   0xe   : > { %p3389_p6 = por %p142_p3, %p44_p0  ;;  %s3289_s24 = smov [#allocation7]  }
   0xf   : > { %s3964_s21 = scalar_select %p3384_p4, 1, 0 }
  0x10   : > { %s3965_s22 = scalar_select %p3389_p6, 1, 0 }
  0x11   : > { %p3394_p8 = pnand %p2510_p5, %p149_p7  ;;  %s161_s25 = sshll.u32 %s3289_s24, 4  ;;  %s3398_s25 = int_to_ptr.vmem [resolvable:$true] %s161_s25 }
  0x12   : > { %s3290_s27 = smov [#allocation8]   ;;  %s3093_s5 = scalar_lea.hbm %s3953_s2, 256 }
  0x13   : > { %p2866_p9 = pneg %p3394_p8  ;;  %s174_s28 = sshll.u32 %s3290_s27, 4  ;;  %s3409_s28 = int_to_ptr.vmem [resolvable:$true] %s174_s28 }
  0x14   : > { %p3094_p12 = scmp.ne.s32.totalorder %s3953_s2, %s3093_s5  ;;  %p3100_p5 = scmp.lt.u32.totalorder %s3093_s5, %s3953_s2 }
  0x15   : > { %p3405_p11 = pnand %p2866_p9, %p3956_p1 }
  0x17   : > { %p3095_p13 = pneg %p3405_p11 }
  0x19   : > { %p3096_p0 = pnand %p3095_p13, %p3094_p12 }
  0x1b   : > { %p3097_p3 = pneg %p3096_p0 }
  0x1d   : > { %p3102_p7 = pnand %p3100_p5, %p3097_p3 }
  0x1f   : > { %3105 = shalt.err (!%p3102_p7)
}
  0x20   : > { %s3106_s10 = scalar_lea.vmem %s3398_s25, 256  ;;  %p3114_p2 = scmp.lt.s32.totalorder %s3398_s25, %s3398_s25 }
  0x21   : > { %p3107_p9 = scmp.ne.s32.totalorder %s3398_s25, %s3106_s10  ;;  %p3115_p12 = scmp.lt.s32.totalorder %s3106_s10, %s3106_s10 }
  0x23   : > { %p3109_p10 = pnand %p3107_p9, %p3095_p13  ;;  %p3116_p0 = por %p3115_p12, %p3114_p2 }
  0x25   : > { %p3110_p1 = pneg %p3109_p10 }
  0x27   : > { %p3117_p6 = pnand %p3116_p0, %p3110_p1 }
  0x29   : > { %3120 = shalt.err (!%p3117_p6)
}
  0x2a   : > { %s3957_s11 = smov 64   ;;  %s3959_s12 = smov 4  }
  0x2b   : > { %2869 = dma.hbm_to_vmem [thread:$0]  (!%p3405_p11), %s3953_s2, 256, %s3398_s25, [#allocation6], %s3957_s11, %s3957_s11, %s3959_s12  }
  0x2c   : > { %s3121_s27 = scalar_lea.hbm %s3954_s3, 256 }
  0x2d   : > { %p3122_p1 = scmp.ne.s32.totalorder %s3954_s3, %s3121_s27  ;;  %p3128_p10 = scmp.lt.u32.totalorder %s3121_s27, %s3954_s3 }
  0x2f   : > { %p3124_p2 = pnand %p3122_p1, %p3095_p13 }
  0x31   : > { %p3125_p6 = pneg %p3124_p2 }
  0x33   : > { %p3130_p3 = pnand %p3128_p10, %p3125_p6 }
  0x35   : > { %3133 = shalt.err (!%p3130_p3)
}
  0x36   : > { %s3134_s25 = scalar_lea.vmem %s3409_s28, 256  ;;  %p3142_p12 = scmp.lt.s32.totalorder %s3409_s28, %s3409_s28 }
  0x37   : > { %p3135_p5 = scmp.ne.s32.totalorder %s3409_s28, %s3134_s25  ;;  %p3143_p0 = scmp.lt.s32.totalorder %s3134_s25, %s3134_s25 }
  0x39   : > { %p3137_p7 = pnand %p3135_p5, %p3095_p13  ;;  %p3144_p1 = por %p3143_p0, %p3142_p12 }
  0x3b   : > { %p3138_p9 = pneg %p3137_p7 }
  0x3d   : > { %p3145_p2 = pnand %p3144_p1, %p3138_p9 }
  0x3f   : > { %3148 = shalt.err (!%p3145_p2)
}
  0x40   : > { %2872 = dma.hbm_to_vmem [thread:$0]  (!%p3405_p11), %s3954_s3, 256, %s3409_s28, [#allocation9], %s3957_s11, %s3957_s11, %s3959_s12  }
  0x41   : > { %s3470_s26 = sadd.s32 1, %s3287_s18   ;;  %s31_s9 = sadd.s32 1, %s3283_s17 }
  0x42   : > { %s28_s10 = ssub.s32 %s3287_s18, %s3470_s26  ;;  %p38_p13 = scmp.ne.s32.totalorder %s3283_s17, %s3279_s16 }
  0x43   : > { %p29_p6 = scmp.eq.s32.totalorder %s28_s10, 0  ;;  %p39_p10 = scmp.eq.s32.totalorder %s3287_s18, 0 }
  0x44   : > { %p3968_p3 = scmp.eq.s32.totalorder %s3375_s19, 1  ;;  %p2886_p7 = scmp.lt.s32.totalorder %s3287_s18, 2 }
  0x45   : > { %s3486_s14 = scalar_select %p29_p6, %s3283_s17, %s31_s9  }
  0x46   : > { %p3480_p5 = por %p3968_p3, %p38_p13  ;;  %p40_p9 = por %p39_p10, %p38_p13 }
  0x47   : > { %s188_s20 = sand.u32 1, %s3283_s17   ;;  %s2571_s28 = sshll.u32 %s3287_s18, 7 }
  0x48   : > { %s3969_s13 = scalar_select %p3480_p5, 1, 0 }
  0x49   : > { %s2514_s24 = sshll.u32 %s188_s20, 3  ;;  %s3970_s0 = sld [smem:[#allocation16_spill]] }
  0x4a   : > { %s192_s5 = scalar_lea.vmem [#allocation2], %s2514_s24  ;;  %p3497_p11 = pnand %p2886_p7, %p40_p9 }
  0x4b   : > { %s199_s6 = sshll.u32 %s192_s5, 4  ;;  %s3504_s9 = scalar_lea.hbm %s3952_s1, %s2571_s28  ;;  %s3495_s6 = int_to_ptr.vmem [resolvable:$true] %s199_s6 }
  0x4c   : > { %s213_s10 = scalar_lea.vmem [#allocation5], %s2514_s24  ;;  %s3508_s29 = scalar_lea.sflag [#allocation3], %s188_s20 }
  0x4d   : > { %s3506_s27 = sshll.u32 %s213_s10, 4  ;;  %p3151_p0 = pneg %p3497_p11  ;;  %s3540_s27 = int_to_ptr.vmem [resolvable:$true] %s3506_s27 }
  0x4f   : > { %s3493_s30 = scalar_lea.hbm %s3970_s0, %s2571_s28  ;;  %s3154_s7 = scalar_lea.hbm %s3970_s0, 256 }
  0x50   : > { %s3149_s5 = scalar_lea.hbm %s3493_s30, 128  ;;  %p3155_p13 = scmp.lt.u32.totalorder %s3493_s30, %s3970_s0 }
  0x51   : > { %p3150_p12 = scmp.ne.s32.totalorder %s3493_s30, %s3149_s5  ;;  %p3156_p6 = scmp.lt.u32.totalorder %s3154_s7, %s3149_s5 }
  0x52   : > { %p3158_p3 = scmp.lt.u32.totalorder %s3149_s5, %s3493_s30 }
  0x53   : > { %p3152_p1 = pnand %p3151_p0, %p3150_p12  ;;  %p3157_p10 = por %p3156_p6, %p3155_p13 }
  0x55   : > { %p3153_p2 = pneg %p3152_p1  ;;  %p3159_p7 = por %p3158_p3, %p3157_p10 }
  0x57   : > { %p3160_p9 = pnand %p3159_p7, %p3153_p2 }
  0x59   : > { %3163 = shalt.err (!%p3160_p9)
}
  0x5a   : > { %s3164_s20 = scalar_lea.vmem %s3495_s6, 128  ;;  %s3293_s11 = smov [#allocation2]  }
  0x5b   : > { %p3165_p12 = scmp.ne.s32.totalorder %s3495_s6, %s3164_s20  ;;  %s3169_s12 = sshll.u32 %s3293_s11, 4  ;;  %s3170_s12 = int_to_ptr.vmem [resolvable:$false] %s3169_s12 }
  0x5c   : > { %s3171_s24 = scalar_lea.vmem %s3170_s12, 256  ;;  %p3172_p4 = scmp.lt.s32.totalorder %s3495_s6, %s3170_s12 }
  0x5d   : > { %p3167_p1 = pnand %p3165_p12, %p3151_p0  ;;  %p3173_p13 = scmp.lt.s32.totalorder %s3171_s24, %s3164_s20 }
  0x5f   : > { %p3168_p5 = pneg %p3167_p1  ;;  %p3174_p6 = por %p3173_p13, %p3172_p4 }
  0x61   : > { %p3175_p10 = pnand %p3174_p6, %p3168_p5 }
  0x63   : > { %3178 = shalt.err (!%p3175_p10)
}
  0x64   : > { %s3972_s10 = smov 4   ;;  %s3973_s5 = smov 64  }
  0x65   : > { %2876 = dma.hbm_to_vmem [thread:$0]  (!%p3497_p11), %s3493_s30, 128, %s3495_s6, %s3508_s29, %s3973_s5, %s3973_s5, %s3972_s10  }
  0x66   : > { %s209_s7 = sand.u32 1, %s3287_s18   ;;  %s3179_s28 = scalar_lea.hbm %s3504_s9, 128 }
  0x67   : > { %s3543_s8 = scalar_lea.sflag [#allocation6], %s209_s7  ;;  %p3180_p4 = scmp.ne.s32.totalorder %s3504_s9, %s3179_s28 }
  0x68   : > { %s3184_s12 = scalar_lea.hbm %s3952_s1, 256  ;;  %p3185_p3 = scmp.lt.u32.totalorder %s3504_s9, %s3952_s1 }
  0x69   : > { %p3182_p5 = pnand %p3180_p4, %p3151_p0  ;;  %p3186_p7 = scmp.lt.u32.totalorder %s3184_s12, %s3179_s28 }
  0x6a   : > { %p3188_p12 = scmp.lt.u32.totalorder %s3179_s28, %s3504_s9 }
  0x6b   : > { %p3183_p2 = pneg %p3182_p5  ;;  %p3187_p9 = por %p3186_p7, %p3185_p3 }
  0x6d   : > { %p3189_p1 = por %p3188_p12, %p3187_p9 }
  0x6f   : > { %p3190_p13 = pnand %p3189_p1, %p3183_p2 }
  0x71   : > { %3193 = shalt.err (!%p3190_p13)
}
  0x72   : > { %s3194_s30 = scalar_lea.vmem %s3540_s27, 128  ;;  %s3294_s6 = smov [#allocation5]  }
  0x73   : > { %p3195_p6 = scmp.ne.s32.totalorder %s3540_s27, %s3194_s30  ;;  %s3199_s29 = sshll.u32 %s3294_s6, 4  ;;  %s3200_s29 = int_to_ptr.vmem [resolvable:$false] %s3199_s29 }
  0x74   : > { %s3201_s0 = scalar_lea.vmem %s3200_s29, 256  ;;  %p3202_p5 = scmp.lt.s32.totalorder %s3540_s27, %s3200_s29 }
  0x75   : > { %p3197_p10 = pnand %p3195_p6, %p3151_p0  ;;  %p3203_p3 = scmp.lt.s32.totalorder %s3201_s0, %s3194_s30 }
  0x77   : > { %p3198_p4 = pneg %p3197_p10  ;;  %p3204_p7 = por %p3203_p3, %p3202_p5 }
  0x79   : > { %p3205_p9 = pnand %p3204_p7, %p3198_p4 }
  0x7b   : > { %3208 = shalt.err (!%p3205_p9)
}
  0x7c   : > { %2879 = dma.hbm_to_vmem [thread:$0]  (!%p3497_p11), %s3504_s9, 128, %s3540_s27, %s3543_s8, %s3973_s5, %s3973_s5, %s3972_s10  }
  0x7d   : > { %232 = sbr.rel (%p3394_p8) target bundleno = 6935 (0x1b17), region = 36  ;;  %s3575_s7 = sand.u32 (!%p3394_p8), 1, %s3279_s16  }
  0x7e   : > { %s2521_s28 = sshll.u32 (!%p3394_p8), %s3575_s7, 3  ;;  %s235_s20 = scalar_lea.sflag (!%p3394_p8), [#allocation3], %s3575_s7 }
  0x7f   : > { %s238_s11 = scalar_lea.vmem (!%p3394_p8), [#allocation2], %s2521_s28  ;;  %p3974_p0 = scmp.ne.s32.totalorder (!%p3394_p8), %s3964_s21, 0 }
  0x84   : > { %3254 = dma.done.wait (%p3974_p0), %s235_s20, 128  }
  0x85   : > { %3256 = vsyncadd (%p3974_p0), %s235_s20, 4294967168  ;;  %s243_s25 = sand.u32 1, %s3375_s19   ;;  %s247_s23 = scalar_lea.vmem [#allocation5], %s2521_s28 }
  0x86   : > { %s244_s9 = scalar_lea.sflag [#allocation6], %s243_s25 }
  0x87   : > { %3258 = dma.done.wait (%p3974_p0), %s244_s9, 128  }
  0x88   : > { %3260 = vsyncadd (%p3974_p0), %s244_s9, 4294967168  ;;  %p3975_p8 = scmp.eq.s32.totalorder %s3375_s19, 0 }
  0x8a   : > { %3262 = dma.done.wait (%p3975_p8), [#allocation6], 256   ;;  %p3976_p11 = pmov %p3975_p8 }
  0x8b   : > { %p3977_p2 = pmov %p3975_p8 }
  0x8c   : > { %3264 = vsyncadd (%p3976_p11), [#allocation6], 4294967040 }
  0x8d   : > { %3266 = dma.done.wait (%p3977_p2), [#allocation9], 256   ;;  %p3978_p12 = pmov %p3977_p2 }
  0x8e   : > { %v3295_v0 = vmov 0.0   ;;  %vm3296_vm0 = vmmov 0   ;;  %v2959_v1 = vld [vmem:[#allocation7] sm:$0xff]   ;;  %v2960_v2 = vld [vmem:[#allocation8] sm:$0xff]   ;;  %v2961_v3 = vld [vmem:[#allocation7 + $0x8] sm:$0xff]   ;;  %vm311_vm1 = vcmask 261120  }
  0x8f   : > { %3268 = vsyncadd (%p3978_p12), [#allocation9], 4294967040  ;;  %2644 = vmatprep.subr.bf16.mxu0 %v3295_v0  ;;  %2652 = vmatprep.subr.bf16.mxu1 %v3295_v0  ;;  %v2962_v4 = vld [vmem:[#allocation8 + $0x8] sm:$0xff]   ;;  %v2963_v5 = vld [vmem:[%s238_s11] sm:$0xff]   ;;  %vm423_vm2 = vcmask 31744   ;;  %s3297_s21 = smov 96  }
  0x90   : > { %2648 = vmatprep.mubr.msk.bf16.mxu0 %vm3296_vm0, %v3295_v0  ;;  %2656 = vmatprep.mubr.msk.bf16.mxu1 %vm3296_vm0, %v3295_v0  ;;  %v2964_v6 = vld [vmem:[%s247_s23] sm:$0xff]   ;;  %vm518_vm3 = vcmask 130048   ;;  %s3298_s27 = smov 64   ;;  %s3299_s10 = smov 124   ;;  %vm2361_vm4 = vcmask 64512   ;;  %vm2364_vm5 = vcmask 97280  }
  0x91   : > { %2645 = vmatpush3.bf16.msra.mxu0 %v2959_v1  ;;  %2653 = vmatpush3.bf16.msra.mxu1 %v2960_v2  ;;  %s3300_s5 = smov 92   ;;  %s3301_s8 = smov 60   ;;  %vm2369_vm6 = vcmask 162816   ;;  %vm2372_vm7 = vcmask 195584   ;;  %vm2375_vm8 = vcmask 228352  }
  0x92   : > { %2646 = vmatprep.subr.bf16.mxu0 %v3295_v0  ;;  %2654 = vmatprep.subr.bf16.mxu1 %v3295_v0  ;;  %s3302_s12 = smov 120   ;;  %s3303_s24 = smov 88  }
  0x93   : > { %s3304_s30 = smov 56   ;;  %s3305_s6 = smov 116  }
  0x94   : > { %s3306_s29 = smov 84   ;;  %s3307_s0 = smov 52  }
  0x95   : > { %2647 = vmatpush3.bf16.msra.mxu0 %v2961_v3  ;;  %2655 = vmatpush3.bf16.msra.mxu1 %v2962_v4  ;;  %s3308_s28 = smov 112   ;;  %s3309_s20 = smov 80  }
  0x96   : > { %2660 = vmatprep.subr.bf16.mxu0 %v3295_v0  ;;  %2666 = vmatprep.subr.bf16.mxu1 %v3295_v0  ;;  %s3310_s11 = smov 48   ;;  %s3311_s25 = smov 108  }
  0x97   : > { %s3312_s9 = smov 76   ;;  %s3313_s23 = smov 44  }
  0x98   : > { %2649 = vmatmul.mubr.msk.bf16.vlgmr.msra.gmra.mrb[0].mxu0 %vm311_vm1, %v2963_v5  ;;  %2657 = vmatmul.mubr.msk.bf16.vlgmr.msra.gmra.mrb[0].mxu1 %vm311_vm1, %v2964_v6  ;;  %p3979_p13 = scmp.ne.s32.totalorder %s3969_s13, 0 }
  0x99   : > { %2662 = vmatprep.mubr.msk.bf16.mxu0 %vm3296_vm0, %v3295_v0  ;;  %2668 = vmatprep.mubr.msk.bf16.mxu1 %vm3296_vm0, %v3295_v0 }
 0x16b   : > { %v349_v7 = vpop.f32.mrb[0].mxu0  ;;  %v414_v8 = vpop.f32.mrb[0].mxu1 }
 0x16c   : > { %v2650_v9 = vpop.f32.mrb[1].mxu0  ;;  %v2658_v10 = vpop.f32.mrb[1].mxu1 }
 0x16d   : > { %v352_v11 = vpop.f32.mrb[2].mxu0  ;;  %v417_v13 = vpop.f32.mrb[2].mxu1 }
 0x16e   : > { %v3612_v12 = vpack.c.bf16 %v352_v11, %v349_v7  ;;  %v2651_v14 = vpop.f32.mrb[3].mxu0  ;;  %v3614_v15 = vpack.c.bf16 %v417_v13, %v414_v8  ;;  %v2659_v16 = vpop.f32.mrb[3].mxu1 }
 0x170   : > { %472 = vrot.lane.b32.xlu0 %v3612_v12, %s3297_s21  ;;  %v428_v17 = vsel %vm423_vm2, %v3614_v15, 0  ;;  %s3314_s21 = smov 104  }
 0x171   : > { %2661 = vmatpush3.bf16.xpose.msra.mxu0 %v428_v17 }
 0x172   : > { %2672 = vmatprep.subr.bf16.mxu0 %v3295_v0 }
 0x178   : > { %2663 = vmatmul.mubr.msk.bf16.vlgmr.msra.gmra.mrb[4].mxu0 %vm423_vm2, %v3612_v12 }
 0x179   : > { %2674 = vmatprep.mubr.msk.bf16.mxu0 %vm3296_vm0, %v3295_v0 }
 0x1e2   : > { %v473_v18 = vpop.permute.xlu0 %472 }
 0x1e3   : > { %v475_v19 = vsel %vm423_vm2, %v473_v18, 0 }
 0x1e4   : > { %2667 = vmatpush3.bf16.xpose.msra.mxu1 %v475_v19 }
 0x1e5   : > { %2678 = vmatprep.subr.bf16.mxu1 %v3295_v0 }
 0x1eb   : > { %2669 = vmatmul.mubr.msk.bf16.vlgmr.msra.gmra.mrb[4].mxu1 %vm423_vm2, %v3614_v15 }
 0x1ec   : > { %2680 = vmatprep.mubr.msk.bf16.mxu1 %vm3296_vm0, %v3295_v0 }
 0x24b   : > { %v464_v20 = vpop.f32.mrb[4].mxu0 }
 0x24c   : > { %v2664_v21 = vpop.f32.mrb[5].mxu0  ;;  %v519_v41 = vsel %vm518_vm3, %v464_v20, -inf }
 0x24d   : > { %v467_v22 = vpop.f32.mrb[6].mxu0 }
 0x24e   : > { %v2665_v23 = vpop.f32.mrb[7].mxu0  ;;  %v522_v30 = vsel %vm518_vm3, %v467_v22, -inf }
 0x2be   : > { %v511_v24 = vpop.f32.mrb[4].mxu1 }
 0x2bf   : > { %v2670_v25 = vpop.f32.mrb[5].mxu1  ;;  %v542_v26 = vsel %vm518_vm3, %v511_v24, -inf }
 0x2c0   : > { %543 = vmax.xlane.f32.xlu0 %v542_v26  ;;  %v514_v27 = vpop.f32.mrb[6].mxu1 }
 0x2c1   : > { %v2671_v28 = vpop.f32.mrb[7].mxu1  ;;  %v545_v29 = vsel %vm518_vm3, %v514_v27, -inf }
 0x2c2   : > { %546 = vmax.xlane.f32.xlu1 %v545_v29 }
 0x2c4   : > { %523 = vmax.xlane.f32.xlu0 %v522_v30 }
 0x34d   : > { %v544_v31 = vpop.xlane.xlu0 %543 }
 0x34e   : > { %v548_v32 = vsub.f32 %v511_v24, %v544_v31 }
 0x34f   : > { %v547_v33 = vpop.xlane.xlu1 %546 }
 0x350   : > { %v550_v34 = vmul.f32 1.442695, %v548_v32  ;;  %v549_v35 = vsub.f32 %v514_v27, %v547_v33 }
 0x351   : > { %v524_v50 = vpop.xlane.xlu0 %523 }
 0x352   : > { %2965 = vpow2.f32 %v550_v34  ;;  %v552_v36 = vmul.f32 1.442695, %v549_v35  ;;  %v526_v51 = vsub.f32 %v467_v22, %v524_v50 }
 0x354   : > { %2967 = vpow2.f32 %v552_v36  ;;  %v529_v54 = vmul.f32 1.442695, %v526_v51 }
 0x35c   : > { %v2966_v37 = vpop.eup %2965 }
 0x35d   : > { %v554_v38 = vsel %vm518_vm3, %v2966_v37, 0.0 }
 0x35e   : > { %v2968_v39 = vpop.eup %2967  ;;  %555 = vadd.xlane.f32.xlu1 %v554_v38 }
 0x35f   : > { %v557_v40 = vsel %vm518_vm3, %v2968_v39, 0.0 }
 0x362   : > { %558 = vadd.xlane.f32.xlu1 %v557_v40 }
 0x373   : > { %565 = vrot.lane.b32.xlu1 %v3612_v12, %s3298_s27  ;;  %s3315_s27 = smov 72  }
 0x397   : > { %520 = vmax.xlane.f32.xlu1 %v519_v41 }
 0x3a8   : > { %660 = vrot.lane.b32.xlu1 %v3614_v15, %s3299_s10 }
 0x3eb   : > { %v556_v42 = vpop.xlane.xlu1 %555 }
 0x3ec   : > { %2969 = vrcp.f32 %v556_v42 }
 0x3ef   : > { %v559_v43 = vpop.xlane.xlu1 %558 }
 0x3f0   : > { %2971 = vrcp.f32 %v559_v43 }
 0x3f3   : > { %v566_v44 = vpop.permute.xlu1 %565 }
 0x3f4   : > { %2673 = vmatpush3.bf16.msra.mxu0 %v566_v44 }
 0x3f5   : > { %2684 = vmatprep.subr.bf16.mxu0 %v3295_v0 }
 0x3f6   : > { %v2970_v45 = vpop.eup %2969 }
 0x3f7   : > { %v562_v47 = vmul.f32 %v2970_v45, %v2966_v37 }
 0x3fa   : > { %v2972_v46 = vpop.eup %2971 }
 0x3fb   : > { %v563_v48 = vmul.f32 %v2972_v46, %v2968_v39 }
 0x3fd   : > { %v564_v49 = vpack.c.bf16 %v563_v48, %v562_v47 }
 0x3ff   : > { %2675 = vmatmul.mubr.msk.bf16.vlgmr.msra.gmra.mrb[8].mxu0 %vm518_vm3, %v564_v49 }
 0x400   : > { %2686 = vmatprep.mubr.msk.bf16.mxu0 %vm3296_vm0, %v3295_v0 }
 0x424   : > { %v521_v52 = vpop.xlane.xlu1 %520 }
 0x425   : > { %v525_v53 = vsub.f32 %v464_v20, %v521_v52 }
 0x427   : > { %v527_v55 = vmul.f32 1.442695, %v525_v53 }
 0x428   : > { %v661_v56 = vpop.permute.xlu1 %660 }
 0x429   : > { %2973 = vpow2.f32 %v527_v55  ;;  %v666_v57 = vsel %vm423_vm2, %v661_v56, 0 }
 0x42a   : > { %2685 = vmatpush3.bf16.xpose.msra.mxu0 %v666_v57  ;;  %2975 = vpow2.f32 %v529_v54 }
 0x42b   : > { %2696 = vmatprep.subr.bf16.mxu0 %v3295_v0 }
 0x433   : > { %v2974_v58 = vpop.eup %2973 }
 0x434   : > { %v531_v59 = vsel %vm518_vm3, %v2974_v58, 0.0  ;;  %v2976_v60 = vpop.eup %2975 }
 0x435   : > { %532 = vadd.xlane.f32.xlu0 %v531_v59  ;;  %v534_v61 = vsel %vm518_vm3, %v2976_v60, 0.0 }
 0x439   : > { %535 = vadd.xlane.f32.xlu0 %v534_v61 }
 0x44f   : > { %709 = vrot.lane.b32.xlu0 %v3612_v12, %s3300_s5  ;;  %s3317_s5 = smov 100  }
 0x453   : > { %657 = vrot.lane.b32.xlu0 %v3612_v12, %s3299_s10  ;;  %s3316_s10 = smov 40  }
 0x4c2   : > { %v533_v62 = vpop.xlane.xlu0 %532 }
 0x4c6   : > { %v536_v63 = vpop.xlane.xlu0 %535 }
 0x4c7   : > { %2977 = vrcp.f32 %v536_v63 }
 0x4c8   : > { %2979 = vrcp.f32 %v533_v62 }
 0x4ca   : > { %v710_v1 = vpop.permute.xlu0 %709 }
 0x4cb   : > { %v712_v14 = vsel %vm423_vm2, %v710_v1, 0 }
 0x4ce   : > { %v658_v2 = vpop.permute.xlu0 %657 }
 0x4cf   : > { %2687 = vmatmul.mubr.msk.bf16.vlgmr.msra.gmra.mrb[12].mxu0 %vm423_vm2, %v658_v2 }
 0x4d0   : > { %2698 = vmatprep.mubr.msk.bf16.mxu0 %vm3296_vm0, %v3295_v0 }
 0x4d1   : > { %v2978_v3 = vpop.eup %2977 }
 0x4d2   : > { %v605_v4 = vpop.f32.mrb[8].mxu0  ;;  %v2980_v5 = vpop.eup %2979  ;;  %v540_v7 = vmul.f32 %v2978_v3, %v2976_v60 }
 0x4d3   : > { %v2676_v6 = vpop.f32.mrb[9].mxu0  ;;  %v539_v11 = vmul.f32 %v2980_v5, %v2974_v58 }
 0x4d4   : > { %v608_v8 = vpop.f32.mrb[10].mxu0 }
 0x4d5   : > { %v612_v9 = vpack.c.bf16 %v608_v8, %v605_v4  ;;  %v2677_v10 = vpop.f32.mrb[11].mxu0  ;;  %v541_v13 = vpack.c.bf16 %v540_v7, %v539_v11 }
 0x4d7   : > { %2679 = vmatpush3.bf16.msra.mxu1 %v612_v9 }
 0x4d8   : > { %2690 = vmatprep.subr.bf16.mxu1 %v3295_v0 }
 0x4da   : > { %2681 = vmatmul.mubr.msk.bf16.vlgmr.msra.gmra.mrb[8].mxu1 %vm518_vm3, %v541_v13 }
 0x4db   : > { %2692 = vmatprep.mubr.msk.bf16.mxu1 %vm3296_vm0, %v3295_v0 }
 0x4e0   : > { %2691 = vmatpush3.bf16.xpose.msra.mxu1 %v712_v14 }
 0x4e1   : > { %2702 = vmatprep.subr.bf16.mxu1 %v3295_v0 }
 0x4e7   : > { %2693 = vmatmul.mubr.msk.bf16.vlgmr.msra.gmra.mrb[12].mxu1 %vm423_vm2, %v661_v56 }
 0x4e8   : > { %2704 = vmatprep.mubr.msk.bf16.mxu1 %vm3296_vm0, %v3295_v0 }
 0x5a2   : > { %v702_v16 = vpop.f32.mrb[12].mxu0 }
 0x5a3   : > { %v2688_v17 = vpop.f32.mrb[13].mxu0  ;;  %v755_v30 = vsel %vm518_vm3, %v702_v16, -inf }
 0x5a4   : > { %v705_v18 = vpop.f32.mrb[14].mxu0 }
 0x5a5   : > { %v2689_v19 = vpop.f32.mrb[15].mxu0  ;;  %v758_v31 = vsel %vm518_vm3, %v705_v18, -inf }
 0x5ad   : > { %v3662_v20 = vpop.f32.mrb[8].mxu1 }
 0x5ae   : > { %v2682_v21 = vpop.f32.mrb[9].mxu1 }
 0x5af   : > { %v3664_v22 = vpop.f32.mrb[10].mxu1 }
 0x5b0   : > { %v2683_v23 = vpop.f32.mrb[11].mxu1 }
 0x5ba   : > { %v748_v24 = vpop.f32.mrb[12].mxu1 }
 0x5bb   : > { %v2694_v25 = vpop.f32.mrb[13].mxu1  ;;  %v778_v26 = vsel %vm518_vm3, %v748_v24, -inf }
 0x5bc   : > { %779 = vmax.xlane.f32.xlu0 %v778_v26  ;;  %v751_v27 = vpop.f32.mrb[14].mxu1 }
 0x5bd   : > { %v2695_v28 = vpop.f32.mrb[15].mxu1  ;;  %v781_v29 = vsel %vm518_vm3, %v751_v27, -inf }
 0x5be   : > { %782 = vmax.xlane.f32.xlu1 %v781_v29 }
 0x5c2   : > { %756 = vmax.xlane.f32.xlu1 %v755_v30 }
 0x5c6   : > { %759 = vmax.xlane.f32.xlu1 %v758_v31 }
 0x649   : > { %v780_v32 = vpop.xlane.xlu0 %779 }
 0x64a   : > { %v784_v33 = vsub.f32 %v748_v24, %v780_v32 }
 0x64b   : > { %v783_v34 = vpop.xlane.xlu1 %782 }
 0x64c   : > { %v786_v35 = vmul.f32 1.442695, %v784_v33  ;;  %v785_v36 = vsub.f32 %v751_v27, %v783_v34 }
 0x64e   : > { %2981 = vpow2.f32 %v786_v35  ;;  %v788_v37 = vmul.f32 1.442695, %v785_v36 }
 0x64f   : > { %v757_v38 = vpop.xlane.xlu1 %756 }
 0x650   : > { %2983 = vpow2.f32 %v788_v37  ;;  %v761_v39 = vsub.f32 %v702_v16, %v757_v38 }
 0x652   : > { %v763_v40 = vmul.f32 1.442695, %v761_v39 }
 0x653   : > { %v760_v41 = vpop.xlane.xlu1 %759 }
 0x654   : > { %2985 = vpow2.f32 %v763_v40  ;;  %v762_v42 = vsub.f32 %v705_v18, %v760_v41 }
 0x656   : > { %v765_v43 = vmul.f32 1.442695, %v762_v42 }
 0x658   : > { %v2982_v44 = vpop.eup %2981  ;;  %2987 = vpow2.f32 %v765_v43 }
 0x659   : > { %v790_v45 = vsel %vm518_vm3, %v2982_v44, 0.0 }
 0x65a   : > { %v2984_v46 = vpop.eup %2983  ;;  %791 = vadd.xlane.f32.xlu0 %v790_v45 }
 0x65b   : > { %v793_v47 = vsel %vm518_vm3, %v2984_v46, 0.0 }
 0x65e   : > { %v2986_v48 = vpop.eup %2985  ;;  %794 = vadd.xlane.f32.xlu0 %v793_v47 }
 0x65f   : > { %v767_v49 = vsel %vm518_vm3, %v2986_v48, 0.0 }
 0x660   : > { %768 = vadd.xlane.f32.xlu1 %v767_v49 }
 0x662   : > { %v2988_v50 = vpop.eup %2987 }
 0x663   : > { %v770_v51 = vsel %vm518_vm3, %v2988_v50, 0.0 }
 0x664   : > { %771 = vadd.xlane.f32.xlu1 %v770_v51 }
 0x674   : > { %801 = vrot.lane.b32.xlu0 %v3612_v12, %s3301_s8  ;;  %s3318_s8 = smov 68  }
 0x675   : > { %895 = vrot.lane.b32.xlu1 %v3614_v15, %s3302_s12 }
 0x678   : > { %944 = vrot.lane.b32.xlu0 %v3612_v12, %s3303_s24  ;;  %s3320_s24 = smov 4  }
 0x67c   : > { %893 = vrot.lane.b32.xlu0 %v3612_v12, %s3302_s12  ;;  %s3319_s12 = smov 36  }
 0x6e7   : > { %v792_v52 = vpop.xlane.xlu0 %791 }
 0x6e8   : > { %2989 = vrcp.f32 %v792_v52 }
 0x6eb   : > { %v795_v53 = vpop.xlane.xlu0 %794 }
 0x6ec   : > { %2991 = vrcp.f32 %v795_v53 }
 0x6ed   : > { %v769_v54 = vpop.xlane.xlu1 %768 }
 0x6ee   : > { %2993 = vrcp.f32 %v769_v54 }
 0x6ef   : > { %v802_v55 = vpop.permute.xlu0 %801 }
 0x6f0   : > { %2697 = vmatpush3.bf16.msra.mxu0 %v802_v55 }
 0x6f1   : > { %v772_v56 = vpop.xlane.xlu1 %771  ;;  %2708 = vmatprep.subr.bf16.mxu0 %v3295_v0 }
 0x6f2   : > { %2995 = vrcp.f32 %v772_v56  ;;  %v2990_v57 = vpop.eup %2989 }
 0x6f3   : > { %v798_v59 = vmul.f32 %v2990_v57, %v2982_v44  ;;  %v945_v3 = vpop.permute.xlu0 %944 }
 0x6f4   : > { %v947_v19 = vsel %vm423_vm2, %v945_v3, 0 }
 0x6f5   : > { %v896_v61 = vpop.permute.xlu1 %895 }
 0x6f6   : > { %v2992_v58 = vpop.eup %2991  ;;  %v901_v1 = vsel %vm423_vm2, %v896_v61, 0 }
 0x6f7   : > { %v799_v60 = vmul.f32 %v2992_v58, %v2984_v46  ;;  %v894_v7 = vpop.permute.xlu0 %893 }
 0x6f8   : > { %v2994_v63 = vpop.eup %2993 }
 0x6f9   : > { %v800_v62 = vpack.c.bf16 %v799_v60, %v798_v59  ;;  %v775_v4 = vmul.f32 %v2994_v63, %v2986_v48 }
 0x6fb   : > { %2699 = vmatmul.mubr.msk.bf16.vlgmr.msra.gmra.mrb[16].mxu0 %vm518_vm3, %v800_v62 }
 0x6fc   : > { %v2996_v2 = vpop.eup %2995  ;;  %2709 = vmatpush3.bf16.xpose.msra.mxu0 %v901_v1  ;;  %2710 = vmatprep.mubr.msk.bf16.mxu0 %vm3296_vm0, %v3295_v0 }
 0x6fd   : > { %v776_v5 = vmul.f32 %v2996_v2, %v2988_v50  ;;  %2720 = vmatprep.subr.bf16.mxu0 %v3295_v0 }
 0x6ff   : > { %v777_v6 = vpack.c.bf16 %v776_v5, %v775_v4 }
 0x703   : > { %2711 = vmatmul.mubr.msk.bf16.vlgmr.msra.gmra.mrb[20].mxu0 %vm423_vm2, %v894_v7 }
 0x704   : > { %2722 = vmatprep.mubr.msk.bf16.mxu0 %vm3296_vm0, %v3295_v0 }
 0x7ce   : > { %v841_v8 = vpop.f32.mrb[16].mxu0 }
 0x7cf   : > { %v2700_v9 = vpop.f32.mrb[17].mxu0 }
 0x7d0   : > { %v844_v10 = vpop.f32.mrb[18].mxu0 }
 0x7d1   : > { %v848_v11 = vpack.c.bf16 %v844_v10, %v841_v8  ;;  %v2701_v13 = vpop.f32.mrb[19].mxu0 }
 0x7d3   : > { %2703 = vmatpush3.bf16.msra.mxu1 %v848_v11 }
 0x7d4   : > { %2714 = vmatprep.subr.bf16.mxu1 %v3295_v0 }
 0x7d6   : > { %2705 = vmatmul.mubr.msk.bf16.vlgmr.msra.gmra.mrb[16].mxu1 %vm518_vm3, %v777_v6  ;;  %v937_v14 = vpop.f32.mrb[20].mxu0 }
 0x7d7   : > { %v2712_v16 = vpop.f32.mrb[21].mxu0  ;;  %2716 = vmatprep.mubr.msk.bf16.mxu1 %vm3296_vm0, %v3295_v0  ;;  %v990_v32 = vsel %vm518_vm3, %v937_v14, -inf }
 0x7d8   : > { %v940_v17 = vpop.f32.mrb[22].mxu0 }
 0x7d9   : > { %v2713_v18 = vpop.f32.mrb[23].mxu0  ;;  %v993_v33 = vsel %vm518_vm3, %v940_v17, -inf }
 0x7dc   : > { %2715 = vmatpush3.bf16.xpose.msra.mxu1 %v947_v19 }
 0x7dd   : > { %2726 = vmatprep.subr.bf16.mxu1 %v3295_v0 }
 0x7e3   : > { %2717 = vmatmul.mubr.msk.bf16.vlgmr.msra.gmra.mrb[20].mxu1 %vm423_vm2, %v896_v61 }
 0x7e4   : > { %2728 = vmatprep.mubr.msk.bf16.mxu1 %vm3296_vm0, %v3295_v0 }
 0x8a9   : > { %v3696_v21 = vpop.f32.mrb[16].mxu1 }
 0x8aa   : > { %v2706_v23 = vpop.f32.mrb[17].mxu1 }
 0x8ab   : > { %v3698_v24 = vpop.f32.mrb[18].mxu1 }
 0x8ac   : > { %v2707_v25 = vpop.f32.mrb[19].mxu1 }
 0x8b6   : > { %v983_v26 = vpop.f32.mrb[20].mxu1 }
 0x8b7   : > { %v2718_v27 = vpop.f32.mrb[21].mxu1  ;;  %v1013_v28 = vsel %vm518_vm3, %v983_v26, -inf }
 0x8b8   : > { %1014 = vmax.xlane.f32.xlu0 %v1013_v28  ;;  %v986_v29 = vpop.f32.mrb[22].mxu1 }
 0x8b9   : > { %v2719_v30 = vpop.f32.mrb[23].mxu1  ;;  %v1016_v31 = vsel %vm518_vm3, %v986_v29, -inf }
 0x8ba   : > { %1017 = vmax.xlane.f32.xlu1 %v1016_v31 }
 0x8be   : > { %991 = vmax.xlane.f32.xlu1 %v990_v32 }
 0x8c2   : > { %994 = vmax.xlane.f32.xlu1 %v993_v33 }
 0x945   : > { %v1015_v34 = vpop.xlane.xlu0 %1014 }
 0x946   : > { %v1019_v35 = vsub.f32 %v983_v26, %v1015_v34 }
 0x947   : > { %v1018_v36 = vpop.xlane.xlu1 %1017 }
 0x948   : > { %v1021_v37 = vmul.f32 1.442695, %v1019_v35  ;;  %v1020_v38 = vsub.f32 %v986_v29, %v1018_v36 }
 0x94a   : > { %2997 = vpow2.f32 %v1021_v37  ;;  %v1023_v39 = vmul.f32 1.442695, %v1020_v38 }
 0x94b   : > { %v992_v40 = vpop.xlane.xlu1 %991 }
 0x94c   : > { %2999 = vpow2.f32 %v1023_v39  ;;  %v996_v41 = vsub.f32 %v937_v14, %v992_v40 }
 0x94e   : > { %v998_v42 = vmul.f32 1.442695, %v996_v41 }
 0x94f   : > { %v995_v43 = vpop.xlane.xlu1 %994 }
 0x950   : > { %3001 = vpow2.f32 %v998_v42  ;;  %v997_v44 = vsub.f32 %v940_v17, %v995_v43 }
 0x952   : > { %v1000_v45 = vmul.f32 1.442695, %v997_v44 }
 0x954   : > { %v2998_v46 = vpop.eup %2997  ;;  %3003 = vpow2.f32 %v1000_v45 }
 0x955   : > { %v1025_v47 = vsel %vm518_vm3, %v2998_v46, 0.0 }
 0x956   : > { %v3000_v48 = vpop.eup %2999  ;;  %1026 = vadd.xlane.f32.xlu0 %v1025_v47 }
 0x957   : > { %v1028_v49 = vsel %vm518_vm3, %v3000_v48, 0.0 }
 0x95a   : > { %v3002_v50 = vpop.eup %3001  ;;  %1029 = vadd.xlane.f32.xlu0 %v1028_v49 }
 0x95b   : > { %v1002_v51 = vsel %vm518_vm3, %v3002_v50, 0.0 }
 0x95c   : > { %1003 = vadd.xlane.f32.xlu1 %v1002_v51 }
 0x95e   : > { %v3004_v52 = vpop.eup %3003 }
 0x95f   : > { %v1005_v53 = vsel %vm518_vm3, %v3004_v52, 0.0 }
 0x960   : > { %1006 = vadd.xlane.f32.xlu1 %v1005_v53 }
 0x970   : > { %1036 = vrot.lane.b32.xlu0 %v3612_v12, %s3304_s30  ;;  %s3321_s30 = smov 16  }
 0x971   : > { %1130 = vrot.lane.b32.xlu1 %v3614_v15, %s3305_s6 }
 0x974   : > { %1179 = vrot.lane.b32.xlu0 %v3612_v12, %s3306_s29  ;;  %s3323_s29 = smov 20  }
 0x978   : > { %1128 = vrot.lane.b32.xlu0 %v3612_v12, %s3305_s6  ;;  %s3322_s6 = smov 8  }
 0x9e3   : > { %v1027_v54 = vpop.xlane.xlu0 %1026 }
 0x9e4   : > { %3005 = vrcp.f32 %v1027_v54 }
 0x9e7   : > { %v1030_v55 = vpop.xlane.xlu0 %1029 }
 0x9e8   : > { %3007 = vrcp.f32 %v1030_v55 }
 0x9e9   : > { %v1004_v56 = vpop.xlane.xlu1 %1003 }
 0x9ea   : > { %3009 = vrcp.f32 %v1004_v56 }
 0x9eb   : > { %v1037_v57 = vpop.permute.xlu0 %1036 }
 0x9ec   : > { %2721 = vmatpush3.bf16.msra.mxu0 %v1037_v57 }
 0x9ed   : > { %v1007_v58 = vpop.xlane.xlu1 %1006  ;;  %2732 = vmatprep.subr.bf16.mxu0 %v3295_v0 }
 0x9ee   : > { %3011 = vrcp.f32 %v1007_v58  ;;  %v3006_v59 = vpop.eup %3005 }
 0x9ef   : > { %v1033_v61 = vmul.f32 %v3006_v59, %v2998_v46  ;;  %v1180_v5 = vpop.permute.xlu0 %1179 }
 0x9f0   : > { %v1182_v25 = vsel %vm423_vm2, %v1180_v5, 0 }
 0x9f1   : > { %v1131_v63 = vpop.permute.xlu1 %1130 }
 0x9f2   : > { %v3008_v60 = vpop.eup %3007  ;;  %v1136_v3 = vsel %vm423_vm2, %v1131_v63, 0 }
 0x9f3   : > { %v1034_v62 = vmul.f32 %v3008_v60, %v3000_v48  ;;  %v1129_v9 = vpop.permute.xlu0 %1128 }
 0x9f4   : > { %v3010_v2 = vpop.eup %3009 }
 0x9f5   : > { %v1035_v1 = vpack.c.bf16 %v1034_v62, %v1033_v61  ;;  %v1010_v6 = vmul.f32 %v3010_v2, %v3002_v50 }
 0x9f7   : > { %2723 = vmatmul.mubr.msk.bf16.vlgmr.msra.gmra.mrb[24].mxu0 %vm518_vm3, %v1035_v1 }
 0x9f8   : > { %v3012_v4 = vpop.eup %3011  ;;  %2733 = vmatpush3.bf16.xpose.msra.mxu0 %v1136_v3  ;;  %2734 = vmatprep.mubr.msk.bf16.mxu0 %vm3296_vm0, %v3295_v0 }
 0x9f9   : > { %v1011_v7 = vmul.f32 %v3012_v4, %v3004_v52  ;;  %2744 = vmatprep.subr.bf16.mxu0 %v3295_v0 }
 0x9fb   : > { %v1012_v8 = vpack.c.bf16 %v1011_v7, %v1010_v6 }
 0x9ff   : > { %2735 = vmatmul.mubr.msk.bf16.vlgmr.msra.gmra.mrb[28].mxu0 %vm423_vm2, %v1129_v9 }
 0xa00   : > { %2746 = vmatprep.mubr.msk.bf16.mxu0 %vm3296_vm0, %v3295_v0 }
 0xaca   : > { %v1076_v10 = vpop.f32.mrb[24].mxu0 }
 0xacb   : > { %v2724_v11 = vpop.f32.mrb[25].mxu0 }
 0xacc   : > { %v1079_v13 = vpop.f32.mrb[26].mxu0 }
 0xacd   : > { %v1083_v14 = vpack.c.bf16 %v1079_v13, %v1076_v10  ;;  %v2725_v16 = vpop.f32.mrb[27].mxu0 }
 0xacf   : > { %2727 = vmatpush3.bf16.msra.mxu1 %v1083_v14 }
 0xad0   : > { %2738 = vmatprep.subr.bf16.mxu1 %v3295_v0 }
 0xad2   : > { %2729 = vmatmul.mubr.msk.bf16.vlgmr.msra.gmra.mrb[24].mxu1 %vm518_vm3, %v1012_v8  ;;  %v1172_v17 = vpop.f32.mrb[28].mxu0 }
 0xad3   : > { %v2736_v18 = vpop.f32.mrb[29].mxu0  ;;  %2740 = vmatprep.mubr.msk.bf16.mxu1 %vm3296_vm0, %v3295_v0  ;;  %v1225_v36 = vsel %vm518_vm3, %v1172_v17, -inf }
 0xad4   : > { %v1175_v19 = vpop.f32.mrb[30].mxu0 }
 0xad5   : > { %v2737_v23 = vpop.f32.mrb[31].mxu0  ;;  %v1228_v37 = vsel %vm518_vm3, %v1175_v19, -inf }
 0xad8   : > { %2739 = vmatpush3.bf16.xpose.msra.mxu1 %v1182_v25 }
 0xad9   : > { %2750 = vmatprep.subr.bf16.mxu1 %v3295_v0 }
 0xadf   : > { %2741 = vmatmul.mubr.msk.bf16.vlgmr.msra.gmra.mrb[28].mxu1 %vm423_vm2, %v1131_v63 }
 0xae0   : > { %2752 = vmatprep.mubr.msk.bf16.mxu1 %vm3296_vm0, %v3295_v0 }
 0xba5   : > { %v3730_v26 = vpop.f32.mrb[24].mxu1 }
 0xba6   : > { %v2730_v27 = vpop.f32.mrb[25].mxu1 }
 0xba7   : > { %v3732_v28 = vpop.f32.mrb[26].mxu1 }
 0xba8   : > { %v2731_v29 = vpop.f32.mrb[27].mxu1 }
 0xbb2   : > { %v1218_v30 = vpop.f32.mrb[28].mxu1 }
 0xbb3   : > { %v2742_v31 = vpop.f32.mrb[29].mxu1  ;;  %v1248_v32 = vsel %vm518_vm3, %v1218_v30, -inf }
 0xbb4   : > { %1249 = vmax.xlane.f32.xlu0 %v1248_v32  ;;  %v1221_v33 = vpop.f32.mrb[30].mxu1 }
 0xbb5   : > { %v2743_v34 = vpop.f32.mrb[31].mxu1  ;;  %v1251_v35 = vsel %vm518_vm3, %v1221_v33, -inf }
 0xbb6   : > { %1252 = vmax.xlane.f32.xlu1 %v1251_v35 }
 0xbba   : > { %1226 = vmax.xlane.f32.xlu1 %v1225_v36 }
 0xbbe   : > { %1229 = vmax.xlane.f32.xlu1 %v1228_v37 }
 0xc41   : > { %v1250_v38 = vpop.xlane.xlu0 %1249 }
 0xc42   : > { %v1254_v39 = vsub.f32 %v1218_v30, %v1250_v38 }
 0xc43   : > { %v1253_v40 = vpop.xlane.xlu1 %1252 }
 0xc44   : > { %v1256_v41 = vmul.f32 1.442695, %v1254_v39  ;;  %v1255_v42 = vsub.f32 %v1221_v33, %v1253_v40 }
 0xc46   : > { %3013 = vpow2.f32 %v1256_v41  ;;  %v1258_v43 = vmul.f32 1.442695, %v1255_v42 }
 0xc47   : > { %v1227_v44 = vpop.xlane.xlu1 %1226 }
 0xc48   : > { %3015 = vpow2.f32 %v1258_v43  ;;  %v1231_v45 = vsub.f32 %v1172_v17, %v1227_v44 }
 0xc4a   : > { %v1233_v46 = vmul.f32 1.442695, %v1231_v45 }
 0xc4b   : > { %v1230_v47 = vpop.xlane.xlu1 %1229 }
 0xc4c   : > { %3017 = vpow2.f32 %v1233_v46  ;;  %v1232_v48 = vsub.f32 %v1175_v19, %v1230_v47 }
 0xc4e   : > { %v1235_v49 = vmul.f32 1.442695, %v1232_v48 }
 0xc50   : > { %v3014_v50 = vpop.eup %3013  ;;  %3019 = vpow2.f32 %v1235_v49 }
 0xc51   : > { %v1260_v51 = vsel %vm518_vm3, %v3014_v50, 0.0 }
 0xc52   : > { %v3016_v52 = vpop.eup %3015  ;;  %1261 = vadd.xlane.f32.xlu0 %v1260_v51 }
 0xc53   : > { %v1263_v53 = vsel %vm518_vm3, %v3016_v52, 0.0 }
 0xc56   : > { %v3018_v54 = vpop.eup %3017  ;;  %1264 = vadd.xlane.f32.xlu0 %v1263_v53 }
 0xc57   : > { %v1237_v55 = vsel %vm518_vm3, %v3018_v54, 0.0 }
 0xc58   : > { %1238 = vadd.xlane.f32.xlu1 %v1237_v55 }
 0xc5a   : > { %v3020_v56 = vpop.eup %3019 }
 0xc5b   : > { %v1240_v57 = vsel %vm518_vm3, %v3020_v56, 0.0 }
 0xc5c   : > { %1241 = vadd.xlane.f32.xlu1 %v1240_v57 }
 0xc6c   : > { %1271 = vrot.lane.b32.xlu0 %v3612_v12, %s3307_s0  ;;  %s3324_s0 = smov 24  }
 0xc6d   : > { %1365 = vrot.lane.b32.xlu1 %v3614_v15, %s3308_s28 }
 0xc70   : > { %1414 = vrot.lane.b32.xlu0 %v3612_v12, %s3309_s20  ;;  %s3326_s20 = smov 28  }
 0xc74   : > { %1363 = vrot.lane.b32.xlu0 %v3612_v12, %s3308_s28  ;;  %s3325_s28 = smov 12  }
 0xcdf   : > { %v1262_v58 = vpop.xlane.xlu0 %1261 }
 0xce0   : > { %3021 = vrcp.f32 %v1262_v58 }
 0xce3   : > { %v1265_v59 = vpop.xlane.xlu0 %1264 }
 0xce4   : > { %3023 = vrcp.f32 %v1265_v59 }
 0xce5   : > { %v1239_v60 = vpop.xlane.xlu1 %1238 }
 0xce6   : > { %3025 = vrcp.f32 %v1239_v60 }
 0xce7   : > { %v1272_v61 = vpop.permute.xlu0 %1271 }
 0xce8   : > { %2745 = vmatpush3.bf16.msra.mxu0 %v1272_v61 }
 0xce9   : > { %v1242_v62 = vpop.xlane.xlu1 %1241  ;;  %2756 = vmatprep.subr.bf16.mxu0 %v3295_v0 }
 0xcea   : > { %3027 = vrcp.f32 %v1242_v62  ;;  %v3022_v63 = vpop.eup %3021 }
 0xceb   : > { %v1268_v2 = vmul.f32 %v3022_v63, %v3014_v50  ;;  %v1415_v9 = vpop.permute.xlu0 %1414 }
 0xcec   : > { %v1417_v31 = vsel %vm423_vm2, %v1415_v9, 0 }
 0xced   : > { %v1366_v4 = vpop.permute.xlu1 %1365 }
 0xcee   : > { %v3024_v1 = vpop.eup %3023  ;;  %v1371_v7 = vsel %vm423_vm2, %v1366_v4, 0 }
 0xcef   : > { %v1269_v3 = vmul.f32 %v3024_v1, %v3016_v52  ;;  %v1364_v14 = vpop.permute.xlu0 %1363 }
 0xcf0   : > { %v3026_v6 = vpop.eup %3025 }
 0xcf1   : > { %v1270_v5 = vpack.c.bf16 %v1269_v3, %v1268_v2  ;;  %v1245_v10 = vmul.f32 %v3026_v6, %v3018_v54 }
 0xcf3   : > { %2747 = vmatmul.mubr.msk.bf16.vlgmr.msra.gmra.mrb[32].mxu0 %vm518_vm3, %v1270_v5 }
 0xcf4   : > { %v3028_v8 = vpop.eup %3027  ;;  %2757 = vmatpush3.bf16.xpose.msra.mxu0 %v1371_v7  ;;  %2758 = vmatprep.mubr.msk.bf16.mxu0 %vm3296_vm0, %v3295_v0 }
 0xcf5   : > { %v1246_v11 = vmul.f32 %v3028_v8, %v3020_v56  ;;  %2768 = vmatprep.subr.bf16.mxu0 %v3295_v0 }
 0xcf7   : > { %v1247_v13 = vpack.c.bf16 %v1246_v11, %v1245_v10 }
 0xcfb   : > { %2759 = vmatmul.mubr.msk.bf16.vlgmr.msra.gmra.mrb[36].mxu0 %vm423_vm2, %v1364_v14 }
 0xcfc   : > { %2770 = vmatprep.mubr.msk.bf16.mxu0 %vm3296_vm0, %v3295_v0 }
 0xdc6   : > { %v1311_v16 = vpop.f32.mrb[32].mxu0 }
 0xdc7   : > { %v2748_v17 = vpop.f32.mrb[33].mxu0 }
 0xdc8   : > { %v1314_v18 = vpop.f32.mrb[34].mxu0 }
 0xdc9   : > { %v1318_v19 = vpack.c.bf16 %v1314_v18, %v1311_v16  ;;  %v2749_v23 = vpop.f32.mrb[35].mxu0 }
 0xdcb   : > { %2751 = vmatpush3.bf16.msra.mxu1 %v1318_v19 }
 0xdcc   : > { %2762 = vmatprep.subr.bf16.mxu1 %v3295_v0 }
 0xdce   : > { %2753 = vmatmul.mubr.msk.bf16.vlgmr.msra.gmra.mrb[32].mxu1 %vm518_vm3, %v1247_v13  ;;  %v1407_v25 = vpop.f32.mrb[36].mxu0 }
 0xdcf   : > { %v2760_v27 = vpop.f32.mrb[37].mxu0  ;;  %2764 = vmatprep.mubr.msk.bf16.mxu1 %vm3296_vm0, %v3295_v0  ;;  %v1460_v42 = vsel %vm518_vm3, %v1407_v25, -inf }
 0xdd0   : > { %v1410_v29 = vpop.f32.mrb[38].mxu0 }
 0xdd1   : > { %v2761_v30 = vpop.f32.mrb[39].mxu0  ;;  %v1463_v43 = vsel %vm518_vm3, %v1410_v29, -inf }
 0xdd4   : > { %2763 = vmatpush3.bf16.xpose.msra.mxu1 %v1417_v31 }
 0xdd5   : > { %2774 = vmatprep.subr.bf16.mxu1 %v3295_v0 }
 0xddb   : > { %2765 = vmatmul.mubr.msk.bf16.vlgmr.msra.gmra.mrb[36].mxu1 %vm423_vm2, %v1366_v4 }
 0xddc   : > { %2776 = vmatprep.mubr.msk.bf16.mxu1 %vm3296_vm0, %v3295_v0 }
 0xea1   : > { %v3764_v32 = vpop.f32.mrb[32].mxu1 }
 0xea2   : > { %v2754_v33 = vpop.f32.mrb[33].mxu1 }
 0xea3   : > { %v3766_v34 = vpop.f32.mrb[34].mxu1 }
 0xea4   : > { %v2755_v35 = vpop.f32.mrb[35].mxu1 }
 0xeae   : > { %v1453_v36 = vpop.f32.mrb[36].mxu1 }
 0xeaf   : > { %v2766_v37 = vpop.f32.mrb[37].mxu1  ;;  %v1483_v38 = vsel %vm518_vm3, %v1453_v36, -inf }
 0xeb0   : > { %1484 = vmax.xlane.f32.xlu0 %v1483_v38  ;;  %v1456_v39 = vpop.f32.mrb[38].mxu1 }
 0xeb1   : > { %v2767_v40 = vpop.f32.mrb[39].mxu1  ;;  %v1486_v41 = vsel %vm518_vm3, %v1456_v39, -inf }
 0xeb2   : > { %1487 = vmax.xlane.f32.xlu1 %v1486_v41 }
 0xeb6   : > { %1461 = vmax.xlane.f32.xlu1 %v1460_v42 }
 0xeba   : > { %1464 = vmax.xlane.f32.xlu1 %v1463_v43 }
 0xf3d   : > { %v1485_v44 = vpop.xlane.xlu0 %1484 }
 0xf3e   : > { %v1489_v45 = vsub.f32 %v1453_v36, %v1485_v44 }
 0xf3f   : > { %v1488_v46 = vpop.xlane.xlu1 %1487 }
 0xf40   : > { %v1491_v47 = vmul.f32 1.442695, %v1489_v45  ;;  %v1490_v48 = vsub.f32 %v1456_v39, %v1488_v46 }
 0xf42   : > { %3029 = vpow2.f32 %v1491_v47  ;;  %v1493_v49 = vmul.f32 1.442695, %v1490_v48 }
 0xf43   : > { %v1462_v50 = vpop.xlane.xlu1 %1461 }
 0xf44   : > { %3031 = vpow2.f32 %v1493_v49  ;;  %v1466_v51 = vsub.f32 %v1407_v25, %v1462_v50 }
 0xf46   : > { %v1468_v52 = vmul.f32 1.442695, %v1466_v51 }
 0xf47   : > { %v1465_v53 = vpop.xlane.xlu1 %1464 }
 0xf48   : > { %3033 = vpow2.f32 %v1468_v52  ;;  %v1467_v54 = vsub.f32 %v1410_v29, %v1465_v53 }
 0xf4a   : > { %v1470_v55 = vmul.f32 1.442695, %v1467_v54 }
 0xf4c   : > { %v3030_v56 = vpop.eup %3029  ;;  %3035 = vpow2.f32 %v1470_v55 }
 0xf4d   : > { %v1495_v57 = vsel %vm518_vm3, %v3030_v56, 0.0 }
 0xf4e   : > { %v3032_v58 = vpop.eup %3031  ;;  %1496 = vadd.xlane.f32.xlu0 %v1495_v57 }
 0xf4f   : > { %v1498_v59 = vsel %vm518_vm3, %v3032_v58, 0.0 }
 0xf52   : > { %v3034_v60 = vpop.eup %3033  ;;  %1499 = vadd.xlane.f32.xlu0 %v1498_v59 }
 0xf53   : > { %v1472_v61 = vsel %vm518_vm3, %v3034_v60, 0.0 }
 0xf54   : > { %1473 = vadd.xlane.f32.xlu1 %v1472_v61 }
 0xf56   : > { %v3036_v62 = vpop.eup %3035 }
 0xf57   : > { %v1475_v63 = vsel %vm518_vm3, %v3036_v62, 0.0 }
 0xf58   : > { %1476 = vadd.xlane.f32.xlu1 %v1475_v63 }
 0xf68   : > { %1506 = vrot.lane.b32.xlu0 %v3612_v12, %s3310_s11  ;;  %s2525_s11 = sshll.u32 %s3575_s7, 4 }
 0xf69   : > { %1600 = vrot.lane.b32.xlu1 %v3614_v15, %s3311_s25 }
 0xf6c   : > { %1649 = vrot.lane.b32.xlu0 %v3612_v12, %s3312_s9 }
 0xf70   : > { %1598 = vrot.lane.b32.xlu0 %v3612_v12, %s3311_s25  ;;  %s284_s25 = scalar_lea.vmem [#allocation10], %s2525_s11 }
 0xf71   : > { %s2394_s9 = sshll.u32 %s284_s25, 4  ;;  %s3899_s9 = int_to_ptr.vmem [resolvable:$true] %s2394_s9 }
 0xfdb   : > { %v1497_v1 = vpop.xlane.xlu0 %1496 }
 0xfdc   : > { %3037 = vrcp.f32 %v1497_v1 }
 0xfdf   : > { %v1500_v2 = vpop.xlane.xlu0 %1499 }
 0xfe0   : > { %3039 = vrcp.f32 %v1500_v2 }
 0xfe1   : > { %v1474_v3 = vpop.xlane.xlu1 %1473 }
 0xfe2   : > { %3041 = vrcp.f32 %v1474_v3 }
 0xfe3   : > { %v1507_v4 = vpop.permute.xlu0 %1506 }
 0xfe4   : > { %2769 = vmatpush3.bf16.msra.mxu0 %v1507_v4 }
 0xfe5   : > { %v1477_v5 = vpop.xlane.xlu1 %1476  ;;  %2780 = vmatprep.subr.bf16.mxu0 %v3295_v0 }
 0xfe6   : > { %3043 = vrcp.f32 %v1477_v5  ;;  %v3038_v6 = vpop.eup %3037 }
 0xfe7   : > { %v1503_v8 = vmul.f32 %v3038_v6, %v3030_v56  ;;  %v1650_v17 = vpop.permute.xlu0 %1649 }
 0xfe8   : > { %v1652_v39 = vsel %vm423_vm2, %v1650_v17, 0 }
 0xfe9   : > { %v1601_v10 = vpop.permute.xlu1 %1600 }
 0xfea   : > { %v3040_v7 = vpop.eup %3039  ;;  %v1606_v14 = vsel %vm423_vm2, %v1601_v10, 0 }
 0xfeb   : > { %v1504_v9 = vmul.f32 %v3040_v7, %v3032_v58  ;;  %v1599_v25 = vpop.permute.xlu0 %1598 }
 0xfec   : > { %v3042_v13 = vpop.eup %3041 }
 0xfed   : > { %v1505_v11 = vpack.c.bf16 %v1504_v9, %v1503_v8  ;;  %v1480_v18 = vmul.f32 %v3042_v13, %v3034_v60 }
 0xfef   : > { %2771 = vmatmul.mubr.msk.bf16.vlgmr.msra.gmra.mrb[40].mxu0 %vm518_vm3, %v1505_v11 }
 0xff0   : > { %v3044_v16 = vpop.eup %3043  ;;  %2781 = vmatpush3.bf16.xpose.msra.mxu0 %v1606_v14  ;;  %2782 = vmatprep.mubr.msk.bf16.mxu0 %vm3296_vm0, %v3295_v0 }
 0xff1   : > { %v1481_v19 = vmul.f32 %v3044_v16, %v3036_v62  ;;  %2792 = vmatprep.subr.bf16.mxu0 %v3295_v0 }
 0xff3   : > { %v1482_v23 = vpack.c.bf16 %v1481_v19, %v1480_v18 }
 0xff7   : > { %2783 = vmatmul.mubr.msk.bf16.vlgmr.msra.gmra.mrb[44].mxu0 %vm423_vm2, %v1599_v25 }
 0xff8   : > { %2794 = vmatprep.mubr.msk.bf16.mxu0 %vm3296_vm0, %v3295_v0 }
0x10c2   : > { %v1546_v27 = vpop.f32.mrb[40].mxu0 }
0x10c3   : > { %v2772_v29 = vpop.f32.mrb[41].mxu0 }
0x10c4   : > { %v1549_v30 = vpop.f32.mrb[42].mxu0 }
0x10c5   : > { %v1553_v31 = vpack.c.bf16 %v1549_v30, %v1546_v27  ;;  %v2773_v33 = vpop.f32.mrb[43].mxu0 }
0x10c7   : > { %2775 = vmatpush3.bf16.msra.mxu1 %v1553_v31 }
0x10c8   : > { %2786 = vmatprep.subr.bf16.mxu1 %v3295_v0 }
0x10ca   : > { %2777 = vmatmul.mubr.msk.bf16.vlgmr.msra.gmra.mrb[40].mxu1 %vm518_vm3, %v1482_v23  ;;  %v1642_v35 = vpop.f32.mrb[44].mxu0 }
0x10cb   : > { %v2784_v36 = vpop.f32.mrb[45].mxu0  ;;  %2788 = vmatprep.mubr.msk.bf16.mxu1 %vm3296_vm0, %v3295_v0  ;;  %v1695_v50 = vsel %vm518_vm3, %v1642_v35, -inf }
0x10cc   : > { %v1645_v37 = vpop.f32.mrb[46].mxu0 }
0x10cd   : > { %v2785_v38 = vpop.f32.mrb[47].mxu0  ;;  %v1698_v51 = vsel %vm518_vm3, %v1645_v37, -inf }
0x10d0   : > { %2787 = vmatpush3.bf16.xpose.msra.mxu1 %v1652_v39 }
0x10d1   : > { %2798 = vmatprep.subr.bf16.mxu1 %v3295_v0 }
0x10d7   : > { %2789 = vmatmul.mubr.msk.bf16.vlgmr.msra.gmra.mrb[44].mxu1 %vm423_vm2, %v1601_v10 }
0x10d8   : > { %2800 = vmatprep.mubr.msk.bf16.mxu1 %vm3296_vm0, %v3295_v0 }
0x119d   : > { %v3798_v40 = vpop.f32.mrb[40].mxu1 }
0x119e   : > { %v2778_v41 = vpop.f32.mrb[41].mxu1 }
0x119f   : > { %v3800_v42 = vpop.f32.mrb[42].mxu1 }
0x11a0   : > { %v2779_v43 = vpop.f32.mrb[43].mxu1 }
0x11aa   : > { %v1688_v44 = vpop.f32.mrb[44].mxu1 }
0x11ab   : > { %v2790_v45 = vpop.f32.mrb[45].mxu1  ;;  %v1718_v46 = vsel %vm518_vm3, %v1688_v44, -inf }
0x11ac   : > { %1719 = vmax.xlane.f32.xlu0 %v1718_v46  ;;  %v1691_v47 = vpop.f32.mrb[46].mxu1 }
0x11ad   : > { %v2791_v48 = vpop.f32.mrb[47].mxu1  ;;  %v1721_v49 = vsel %vm518_vm3, %v1691_v47, -inf }
0x11ae   : > { %1722 = vmax.xlane.f32.xlu1 %v1721_v49 }
0x11b2   : > { %1696 = vmax.xlane.f32.xlu1 %v1695_v50 }
0x11b6   : > { %1699 = vmax.xlane.f32.xlu1 %v1698_v51 }
0x1239   : > { %v1720_v52 = vpop.xlane.xlu0 %1719 }
0x123a   : > { %v1724_v53 = vsub.f32 %v1688_v44, %v1720_v52 }
0x123b   : > { %v1723_v54 = vpop.xlane.xlu1 %1722 }
0x123c   : > { %v1726_v55 = vmul.f32 1.442695, %v1724_v53  ;;  %v1725_v56 = vsub.f32 %v1691_v47, %v1723_v54 }
0x123e   : > { %3045 = vpow2.f32 %v1726_v55  ;;  %v1728_v57 = vmul.f32 1.442695, %v1725_v56 }
0x123f   : > { %v1697_v58 = vpop.xlane.xlu1 %1696 }
0x1240   : > { %3047 = vpow2.f32 %v1728_v57  ;;  %v1701_v59 = vsub.f32 %v1642_v35, %v1697_v58 }
0x1242   : > { %v1703_v60 = vmul.f32 1.442695, %v1701_v59 }
0x1243   : > { %v1700_v61 = vpop.xlane.xlu1 %1699 }
0x1244   : > { %3049 = vpow2.f32 %v1703_v60  ;;  %v1702_v62 = vsub.f32 %v1645_v37, %v1700_v61 }
0x1246   : > { %v1705_v63 = vmul.f32 1.442695, %v1702_v62 }
0x1248   : > { %v3046_v1 = vpop.eup %3045  ;;  %3051 = vpow2.f32 %v1705_v63 }
0x1249   : > { %v1730_v2 = vsel %vm518_vm3, %v3046_v1, 0.0 }
0x124a   : > { %v3048_v3 = vpop.eup %3047  ;;  %1731 = vadd.xlane.f32.xlu0 %v1730_v2 }
0x124b   : > { %v1733_v4 = vsel %vm518_vm3, %v3048_v3, 0.0 }
0x124e   : > { %v3050_v5 = vpop.eup %3049  ;;  %1734 = vadd.xlane.f32.xlu0 %v1733_v4 }
0x124f   : > { %v1707_v6 = vsel %vm518_vm3, %v3050_v5, 0.0 }
0x1250   : > { %1708 = vadd.xlane.f32.xlu1 %v1707_v6 }
0x1252   : > { %v3052_v7 = vpop.eup %3051 }
0x1253   : > { %v1710_v8 = vsel %vm518_vm3, %v3052_v7, 0.0 }
0x1254   : > { %1711 = vadd.xlane.f32.xlu1 %v1710_v8 }
0x1264   : > { %1741 = vrot.lane.b32.xlu0 %v3612_v12, %s3313_s23  ;;  %s2573_s23 = sshll.u32 %s3375_s19, 8 }
0x1265   : > { %1835 = vrot.lane.b32.xlu1 %v3614_v15, %s3314_s21  ;;  %s3905_s19 = scalar_lea.hbm %s3955_s4, %s2573_s23 }
0x1268   : > { %1884 = vrot.lane.b32.xlu0 %v3612_v12, %s3315_s27 }
0x126c   : > { %1833 = vrot.lane.b32.xlu0 %v3612_v12, %s3314_s21 }
0x12d7   : > { %v1732_v9 = vpop.xlane.xlu0 %1731 }
0x12d8   : > { %3053 = vrcp.f32 %v1732_v9 }
0x12db   : > { %v1735_v10 = vpop.xlane.xlu0 %1734 }
0x12dc   : > { %3055 = vrcp.f32 %v1735_v10 }
0x12dd   : > { %v1709_v11 = vpop.xlane.xlu1 %1708 }
0x12de   : > { %3057 = vrcp.f32 %v1709_v11 }
0x12df   : > { %v1742_v13 = vpop.permute.xlu0 %1741 }
0x12e0   : > { %2793 = vmatpush3.bf16.msra.mxu0 %v1742_v13 }
0x12e1   : > { %v1712_v14 = vpop.xlane.xlu1 %1711  ;;  %2804 = vmatprep.subr.bf16.mxu0 %v3295_v0 }
0x12e2   : > { %3059 = vrcp.f32 %v1712_v14  ;;  %v3054_v16 = vpop.eup %3053 }
0x12e3   : > { %v1738_v18 = vmul.f32 %v3054_v16, %v3046_v1  ;;  %v1885_v31 = vpop.permute.xlu0 %1884 }
0x12e4   : > { %v1887_v49 = vsel %vm423_vm2, %v1885_v31, 0 }
0x12e5   : > { %v1836_v23 = vpop.permute.xlu1 %1835 }
0x12e6   : > { %v3056_v17 = vpop.eup %3055  ;;  %v1841_v29 = vsel %vm423_vm2, %v1836_v23, 0 }
0x12e7   : > { %v1739_v19 = vmul.f32 %v3056_v17, %v3048_v3  ;;  %v1834_v37 = vpop.permute.xlu0 %1833 }
0x12e8   : > { %v3058_v27 = vpop.eup %3057 }
0x12e9   : > { %v1740_v25 = vpack.c.bf16 %v1739_v19, %v1738_v18  ;;  %v1715_v33 = vmul.f32 %v3058_v27, %v3050_v5 }
0x12eb   : > { %2795 = vmatmul.mubr.msk.bf16.vlgmr.msra.gmra.mrb[48].mxu0 %vm518_vm3, %v1740_v25 }
0x12ec   : > { %v3060_v30 = vpop.eup %3059  ;;  %2805 = vmatpush3.bf16.xpose.msra.mxu0 %v1841_v29  ;;  %2806 = vmatprep.mubr.msk.bf16.mxu0 %vm3296_vm0, %v3295_v0 }
0x12ed   : > { %v1716_v35 = vmul.f32 %v3060_v30, %v3052_v7  ;;  %2816 = vmatprep.subr.bf16.mxu0 %v3295_v0 }
0x12ef   : > { %v1717_v36 = vpack.c.bf16 %v1716_v35, %v1715_v33 }
0x12f3   : > { %2807 = vmatmul.mubr.msk.bf16.vlgmr.msra.gmra.mrb[52].mxu0 %vm423_vm2, %v1834_v37 }
0x12f4   : > { %2818 = vmatprep.mubr.msk.bf16.mxu0 %vm3296_vm0, %v3295_v0 }
0x13be   : > { %v1781_v38 = vpop.f32.mrb[48].mxu0 }
0x13bf   : > { %v2796_v39 = vpop.f32.mrb[49].mxu0 }
0x13c0   : > { %v1784_v41 = vpop.f32.mrb[50].mxu0 }
0x13c1   : > { %v1788_v43 = vpack.c.bf16 %v1784_v41, %v1781_v38  ;;  %v2797_v44 = vpop.f32.mrb[51].mxu0 }
0x13c3   : > { %2799 = vmatpush3.bf16.msra.mxu1 %v1788_v43 }
0x13c4   : > { %2810 = vmatprep.subr.bf16.mxu1 %v3295_v0 }
0x13c6   : > { %2801 = vmatmul.mubr.msk.bf16.vlgmr.msra.gmra.mrb[48].mxu1 %vm518_vm3, %v1717_v36  ;;  %v1877_v45 = vpop.f32.mrb[52].mxu0 }
0x13c7   : > { %v2808_v46 = vpop.f32.mrb[53].mxu0  ;;  %2812 = vmatprep.mubr.msk.bf16.mxu1 %vm3296_vm0, %v3295_v0  ;;  %v1930_v60 = vsel %vm518_vm3, %v1877_v45, -inf }
0x13c8   : > { %v1880_v47 = vpop.f32.mrb[54].mxu0 }
0x13c9   : > { %v2809_v48 = vpop.f32.mrb[55].mxu0  ;;  %v1933_v61 = vsel %vm518_vm3, %v1880_v47, -inf }
0x13cc   : > { %2811 = vmatpush3.bf16.xpose.msra.mxu1 %v1887_v49 }
0x13cd   : > { %2822 = vmatprep.subr.bf16.mxu1 %v3295_v0 }
0x13d3   : > { %2813 = vmatmul.mubr.msk.bf16.vlgmr.msra.gmra.mrb[52].mxu1 %vm423_vm2, %v1836_v23 }
0x13d4   : > { %2824 = vmatprep.mubr.msk.bf16.mxu1 %vm3296_vm0, %v3295_v0 }
0x1499   : > { %v3832_v50 = vpop.f32.mrb[48].mxu1 }
0x149a   : > { %v2802_v51 = vpop.f32.mrb[49].mxu1 }
0x149b   : > { %v3834_v52 = vpop.f32.mrb[50].mxu1 }
0x149c   : > { %v2803_v53 = vpop.f32.mrb[51].mxu1 }
0x14a6   : > { %v1923_v54 = vpop.f32.mrb[52].mxu1 }
0x14a7   : > { %v2814_v55 = vpop.f32.mrb[53].mxu1  ;;  %v1953_v56 = vsel %vm518_vm3, %v1923_v54, -inf }
0x14a8   : > { %1954 = vmax.xlane.f32.xlu0 %v1953_v56  ;;  %v1926_v57 = vpop.f32.mrb[54].mxu1 }
0x14a9   : > { %v2815_v58 = vpop.f32.mrb[55].mxu1  ;;  %v1956_v59 = vsel %vm518_vm3, %v1926_v57, -inf }
0x14aa   : > { %1957 = vmax.xlane.f32.xlu1 %v1956_v59 }
0x14ae   : > { %1931 = vmax.xlane.f32.xlu1 %v1930_v60 }
0x14b2   : > { %1934 = vmax.xlane.f32.xlu1 %v1933_v61 }
0x1535   : > { %v1955_v62 = vpop.xlane.xlu0 %1954 }
0x1536   : > { %v1959_v63 = vsub.f32 %v1923_v54, %v1955_v62 }
0x1537   : > { %v1958_v1 = vpop.xlane.xlu1 %1957 }
0x1538   : > { %v1961_v2 = vmul.f32 1.442695, %v1959_v63  ;;  %v1960_v3 = vsub.f32 %v1926_v57, %v1958_v1 }
0x153a   : > { %3061 = vpow2.f32 %v1961_v2  ;;  %v1963_v4 = vmul.f32 1.442695, %v1960_v3 }
0x153b   : > { %v1932_v5 = vpop.xlane.xlu1 %1931 }
0x153c   : > { %3063 = vpow2.f32 %v1963_v4  ;;  %v1936_v6 = vsub.f32 %v1877_v45, %v1932_v5 }
0x153e   : > { %v1938_v7 = vmul.f32 1.442695, %v1936_v6 }
0x153f   : > { %v1935_v8 = vpop.xlane.xlu1 %1934 }
0x1540   : > { %3065 = vpow2.f32 %v1938_v7  ;;  %v1937_v9 = vsub.f32 %v1880_v47, %v1935_v8 }
0x1542   : > { %v1940_v10 = vmul.f32 1.442695, %v1937_v9 }
0x1544   : > { %v3062_v11 = vpop.eup %3061  ;;  %3067 = vpow2.f32 %v1940_v10 }
0x1545   : > { %v1965_v13 = vsel %vm518_vm3, %v3062_v11, 0.0 }
0x1546   : > { %v3064_v14 = vpop.eup %3063  ;;  %1966 = vadd.xlane.f32.xlu0 %v1965_v13 }
0x1547   : > { %v1968_v16 = vsel %vm518_vm3, %v3064_v14, 0.0 }
0x154a   : > { %v3066_v17 = vpop.eup %3065  ;;  %1969 = vadd.xlane.f32.xlu0 %v1968_v16 }
0x154b   : > { %v1942_v18 = vsel %vm518_vm3, %v3066_v17, 0.0 }
0x154c   : > { %1943 = vadd.xlane.f32.xlu1 %v1942_v18 }
0x154e   : > { %v3068_v19 = vpop.eup %3067 }
0x154f   : > { %v1945_v23 = vsel %vm518_vm3, %v3068_v19, 0.0 }
0x1550   : > { %1946 = vadd.xlane.f32.xlu1 %v1945_v23 }
0x1560   : > { %1976 = vrot.lane.b32.xlu0 %v3612_v12, %s3316_s10  ;;  %s2381_s10 = scalar_lea.sflag [#allocation4], %s3575_s7 }
0x1561   : > { %2070 = vrot.lane.b32.xlu1 %v3614_v15, %s3317_s5 }
0x1564   : > { %2119 = vrot.lane.b32.xlu0 %v3612_v12, %s3318_s8  ;;  %s3327_s8 = smov [#allocation10]  }
0x1568   : > { %2068 = vrot.lane.b32.xlu0 %v3612_v12, %s3317_s5  ;;  %s3209_s5 = scalar_lea.vmem %s3899_s9, 256 }
0x1569   : > { %p3210_p1 = scmp.ne.s32.totalorder %s3899_s9, %s3209_s5 }
0x156b   : > { %p3211_p6 = pnand %p3210_p1, %p3979_p13 }
0x156d   : > { %p3212_p10 = pneg %p3211_p6 }
0x15d3   : > { %v1967_v25 = vpop.xlane.xlu0 %1966 }
0x15d4   : > { %3069 = vrcp.f32 %v1967_v25 }
0x15d7   : > { %v1970_v27 = vpop.xlane.xlu0 %1969 }
0x15d8   : > { %3071 = vrcp.f32 %v1970_v27 }
0x15d9   : > { %v1944_v29 = vpop.xlane.xlu1 %1943 }
0x15da   : > { %3073 = vrcp.f32 %v1944_v29 }
0x15db   : > { %v1977_v30 = vpop.permute.xlu0 %1976 }
0x15dc   : > { %2817 = vmatpush3.bf16.msra.mxu0 %v1977_v30 }
0x15dd   : > { %v1947_v31 = vpop.xlane.xlu1 %1946  ;;  %2828 = vmatprep.subr.bf16.mxu0 %v3295_v0 }
0x15de   : > { %3075 = vrcp.f32 %v1947_v31  ;;  %v3070_v33 = vpop.eup %3069 }
0x15df   : > { %v1973_v15 = vmul.f32 %v3070_v33, %v3062_v11  ;;  %v2120_v44 = vpop.permute.xlu0 %2119 }
0x15e0   : > { %v2122_v60 = vsel %vm423_vm2, %v2120_v44, 0 }
0x15e1   : > { %v2071_v37 = vpop.permute.xlu1 %2070 }
0x15e2   : > { %v3072_v35 = vpop.eup %3071  ;;  %v2076_v41 = vsel %vm423_vm2, %v2071_v37, 0 }
0x15e3   : > { %v1974_v36 = vmul.f32 %v3072_v35, %v3064_v14  ;;  %v2069_v48 = vpop.permute.xlu0 %2068 }
0x15e4   : > { %v3074_v39 = vpop.eup %3073 }
0x15e5   : > { %v1975_v38 = vpack.c.bf16 %v1974_v36, %v1973_v15  ;;  %v1950_v45 = vmul.f32 %v3074_v39, %v3066_v17 }
0x15e7   : > { %2819 = vmatmul.mubr.msk.bf16.vlgmr.msra.gmra.mrb[56].mxu0 %vm518_vm3, %v1975_v38 }
0x15e8   : > { %v3076_v43 = vpop.eup %3075  ;;  %2829 = vmatpush3.bf16.xpose.msra.mxu0 %v2076_v41  ;;  %2830 = vmatprep.mubr.msk.bf16.mxu0 %vm3296_vm0, %v3295_v0 }
0x15e9   : > { %v1951_v46 = vmul.f32 %v3076_v43, %v3068_v19  ;;  %2840 = vmatprep.subr.bf16.mxu0 %v3295_v0 }
0x15eb   : > { %v1952_v47 = vpack.c.bf16 %v1951_v46, %v1950_v45 }
0x15ef   : > { %2831 = vmatmul.mubr.msk.bf16.vlgmr.msra.gmra.mrb[60].mxu0 %vm423_vm2, %v2069_v48 }
0x15f0   : > { %2842 = vmatprep.mubr.msk.bf16.mxu0 %vm3296_vm0, %v3295_v0 }
0x16ba   : > { %v2016_v49 = vpop.f32.mrb[56].mxu0 }
0x16bb   : > { %v2820_v51 = vpop.f32.mrb[57].mxu0 }
0x16bc   : > { %v2019_v53 = vpop.f32.mrb[58].mxu0 }
0x16bd   : > { %v2023_v54 = vpack.c.bf16 %v2019_v53, %v2016_v49  ;;  %v2821_v55 = vpop.f32.mrb[59].mxu0 }
0x16bf   : > { %2823 = vmatpush3.bf16.msra.mxu1 %v2023_v54 }
0x16c0   : > { %2834 = vmatprep.subr.bf16.mxu1 %v3295_v0 }
0x16c2   : > { %2825 = vmatmul.mubr.msk.bf16.vlgmr.msra.gmra.mrb[56].mxu1 %vm518_vm3, %v1952_v47  ;;  %v2112_v56 = vpop.f32.mrb[60].mxu0 }
0x16c3   : > { %v2832_v57 = vpop.f32.mrb[61].mxu0  ;;  %2836 = vmatprep.mubr.msk.bf16.mxu1 %vm3296_vm0, %v3295_v0  ;;  %v2165_v8 = vsel %vm518_vm3, %v2112_v56, -inf }
0x16c4   : > { %v2115_v58 = vpop.f32.mrb[62].mxu0 }
0x16c5   : > { %v2833_v59 = vpop.f32.mrb[63].mxu0  ;;  %v2168_v9 = vsel %vm518_vm3, %v2115_v58, -inf }
0x16c8   : > { %2835 = vmatpush3.bf16.xpose.msra.mxu1 %v2122_v60 }
0x16c9   : > { %2846 = vmatprep.subr.bf16.mxu1 %v3295_v0 }
0x16cf   : > { %2837 = vmatmul.mubr.msk.bf16.vlgmr.msra.gmra.mrb[60].mxu1 %vm423_vm2, %v2071_v37 }
0x16d0   : > { %2848 = vmatprep.mubr.msk.bf16.mxu1 %vm3296_vm0, %v3295_v0 }
0x1795   : > { %v2061_v61 = vpop.f32.mrb[56].mxu1 }
0x1796   : > { %v2826_v62 = vpop.f32.mrb[57].mxu1 }
0x1797   : > { %v2064_v63 = vpop.f32.mrb[58].mxu1 }
0x1798   : > { %v2827_v1 = vpop.f32.mrb[59].mxu1 }
0x17a2   : > { %v2158_v2 = vpop.f32.mrb[60].mxu1 }
0x17a3   : > { %v2838_v3 = vpop.f32.mrb[61].mxu1  ;;  %v2188_v4 = vsel %vm518_vm3, %v2158_v2, -inf }
0x17a4   : > { %2189 = vmax.xlane.f32.xlu0 %v2188_v4  ;;  %v2161_v5 = vpop.f32.mrb[62].mxu1 }
0x17a5   : > { %v2839_v6 = vpop.f32.mrb[63].mxu1  ;;  %v2191_v7 = vsel %vm518_vm3, %v2161_v5, -inf }
0x17a6   : > { %2192 = vmax.xlane.f32.xlu1 %v2191_v7 }
0x17aa   : > { %2166 = vmax.xlane.f32.xlu1 %v2165_v8 }
0x17ae   : > { %2169 = vmax.xlane.f32.xlu1 %v2168_v9 }
0x1831   : > { %v2190_v0 = vpop.xlane.xlu0 %2189 }
0x1832   : > { %v2194_v10 = vsub.f32 %v2158_v2, %v2190_v0 }
0x1833   : > { %v2193_v11 = vpop.xlane.xlu1 %2192 }
0x1834   : > { %v2196_v13 = vmul.f32 1.442695, %v2194_v10  ;;  %v2195_v14 = vsub.f32 %v2161_v5, %v2193_v11 }
0x1836   : > { %3077 = vpow2.f32 %v2196_v13  ;;  %v2198_v16 = vmul.f32 1.442695, %v2195_v14 }
0x1837   : > { %v2167_v17 = vpop.xlane.xlu1 %2166 }
0x1838   : > { %3079 = vpow2.f32 %v2198_v16  ;;  %v2171_v18 = vsub.f32 %v2112_v56, %v2167_v17 }
0x183a   : > { %v2173_v19 = vmul.f32 1.442695, %v2171_v18 }
0x183b   : > { %v2170_v23 = vpop.xlane.xlu1 %2169 }
0x183c   : > { %3081 = vpow2.f32 %v2173_v19  ;;  %v2172_v25 = vsub.f32 %v2115_v58, %v2170_v23 }
0x183e   : > { %v2175_v27 = vmul.f32 1.442695, %v2172_v25 }
0x1840   : > { %v3078_v29 = vpop.eup %3077  ;;  %3083 = vpow2.f32 %v2175_v27 }
0x1841   : > { %v2200_v30 = vsel %vm518_vm3, %v3078_v29, 0.0 }
0x1842   : > { %v3080_v31 = vpop.eup %3079  ;;  %2201 = vadd.xlane.f32.xlu0 %v2200_v30 }
0x1843   : > { %v2203_v33 = vsel %vm518_vm3, %v3080_v31, 0.0 }
0x1846   : > { %v3082_v35 = vpop.eup %3081  ;;  %2204 = vadd.xlane.f32.xlu0 %v2203_v33 }
0x1847   : > { %v2177_v15 = vsel %vm518_vm3, %v3082_v35, 0.0 }
0x1848   : > { %2178 = vadd.xlane.f32.xlu1 %v2177_v15 }
0x184a   : > { %v3084_v36 = vpop.eup %3083 }
0x184b   : > { %v2180_v37 = vsel %vm518_vm3, %v3084_v36, 0.0 }
0x184c   : > { %2181 = vadd.xlane.f32.xlu1 %v2180_v37 }
0x185c   : > { %2211 = vrot.lane.b32.xlu0 %v3612_v12, %s3319_s12  ;;  %s3213_s12 = sshll.u32 %s3327_s8, 4  ;;  %s3214_s12 = int_to_ptr.vmem [resolvable:$false] %s3213_s12 }
0x185d   : > { %2307 = vrot.lane.b32.xlu1 %v3698_v24, %s3320_s24  ;;  %p3216_p4 = scmp.lt.s32.totalorder %s3899_s9, %s3214_s12 }
0x1860   : > { %2305 = vrot.lane.b32.xlu0 %v3696_v21, %s3320_s24  ;;  %s3215_s24 = scalar_lea.vmem %s3214_s12, 512 }
0x1861   : > { %2329 = vrot.lane.b32.xlu1 %v3798_v40, %s3321_s30  ;;  %p3217_p5 = scmp.lt.s32.totalorder %s3215_s24, %s3209_s5 }
0x1863   : > { %p3218_p3 = por %p3217_p5, %p3216_p4 }
0x1864   : > { %2313 = vrot.lane.b32.xlu0 %v3730_v26, %s3322_s6 }
0x1865   : > { %2337 = vrot.lane.b32.xlu1 %v3832_v50, %s3323_s29  ;;  %p3219_p7 = pnand %p3218_p3, %p3212_p10 }
0x1868   : > { %2315 = vrot.lane.b32.xlu0 %v3732_v28, %s3322_s6 }
0x1869   : > { %2345 = vrot.lane.b32.xlu1 %v2061_v61, %s3324_s0 }
0x186c   : > { %2321 = vrot.lane.b32.xlu0 %v3764_v32, %s3325_s28 }
0x1870   : > { %2323 = vrot.lane.b32.xlu0 %v3766_v34, %s3325_s28 }
0x1874   : > { %2331 = vrot.lane.b32.xlu0 %v3800_v42, %s3321_s30 }
0x1878   : > { %2339 = vrot.lane.b32.xlu0 %v3834_v52, %s3323_s29 }
0x187c   : > { %2347 = vrot.lane.b32.xlu0 %v2064_v63, %s3324_s0 }
0x18cf   : > { %v2202_v12 = vpop.xlane.xlu0 %2201 }
0x18d0   : > { %3085 = vrcp.f32 %v2202_v12 }
0x18d3   : > { %v2205_v21 = vpop.xlane.xlu0 %2204 }
0x18d4   : > { %3087 = vrcp.f32 %v2205_v21 }
0x18d5   : > { %v2179_v32 = vpop.xlane.xlu1 %2178 }
0x18d7   : > { %v2212_v24 = vpop.permute.xlu0 %2211 }
0x18d8   : > { %2841 = vmatpush3.bf16.msra.mxu0 %v2212_v24 }
0x18d9   : > { %v2182_v34 = vpop.xlane.xlu1 %2181 }
0x18da   : > { %v3086_v26 = vpop.eup %3085  ;;  %3089 = vrcp.f32 %v2182_v34 }
0x18db   : > { %v2208_v40 = vmul.f32 %v3086_v26, %v3078_v29  ;;  %3091 = vrcp.f32 %v2179_v32  ;;  %v2306_v55 = vpop.permute.xlu0 %2305 }
0x18dc   : > { %v2359_v63 = vsel %vm423_vm2, %v3662_v20, %v2306_v55 }
0x18dd   : > { %v2308_v59 = vpop.permute.xlu1 %2307 }
0x18de   : > { %v3088_v28 = vpop.eup %3087  ;;  %v2360_v7 = vsel %vm423_vm2, %v3664_v22, %v2308_v59 }
0x18df   : > { %v2209_v50 = vmul.f32 %v3088_v28, %v3080_v31  ;;  %v2314_v56 = vpop.permute.xlu0 %2313 }
0x18e0   : > { %v2362_v1 = vsel %vm2361_vm4, %v2359_v63, %v2314_v56 }
0x18e1   : > { %v2210_v38 = vpack.c.bf16 %v2209_v50, %v2208_v40  ;;  %v2330_v61 = vpop.permute.xlu1 %2329 }
0x18e3   : > { %2843 = vmatmul.mubr.msk.bf16.vlgmr.msra.gmra.mrb[64].mxu0 %vm518_vm3, %v2210_v38  ;;  %v2316_v57 = vpop.permute.xlu0 %2315 }
0x18e4   : > { %v3090_v42 = vpop.eup %3089  ;;  %v2363_v9 = vsel %vm2361_vm4, %v2360_v7, %v2316_v57 }
0x18e5   : > { %v3092_v39 = vpop.eup %3091  ;;  %v2186_v43 = vmul.f32 %v3090_v42, %v3084_v36  ;;  %v2338_v2 = vpop.permute.xlu1 %2337 }
0x18e6   : > { %v2185_v47 = vmul.f32 %v3092_v39, %v3082_v35 }
0x18e7   : > { %v2322_v58 = vpop.permute.xlu0 %2321 }
0x18e8   : > { %v2187_v48 = vpack.c.bf16 %v2186_v43, %v2185_v47  ;;  %v2365_v3 = vsel %vm2364_vm5, %v2362_v1, %v2322_v58 }
0x18e9   : > { %v2367_v5 = vsel %vm518_vm3, %v2365_v3, %v2330_v61  ;;  %v2346_v6 = vpop.permute.xlu1 %2345 }
0x18ea   : > { %v2370_v8 = vsel %vm2369_vm6, %v2367_v5, %v2338_v2 }
0x18eb   : > { %v2324_v60 = vpop.permute.xlu0 %2323  ;;  %v2373_v10 = vsel %vm2372_vm7, %v2370_v8, %v2346_v6 }
0x18ec   : > { %v2366_v20 = vsel %vm2364_vm5, %v2363_v9, %v2324_v60 }
0x18ef   : > { %v2332_v62 = vpop.permute.xlu0 %2331 }
0x18f0   : > { %v2368_v11 = vsel %vm518_vm3, %v2366_v20, %v2332_v62 }
0x18f3   : > { %v2340_v4 = vpop.permute.xlu0 %2339 }
0x18f4   : > { %v2371_v14 = vsel %vm2369_vm6, %v2368_v11, %v2340_v4 }
0x18f7   : > { %v2348_v0 = vpop.permute.xlu0 %2347 }
0x18f8   : > { %v2374_v16 = vsel %vm2372_vm7, %v2371_v14, %v2348_v0 }
0x19b6   : > { %v2251_v52 = vpop.f32.mrb[64].mxu0 }
0x19b7   : > { %v2844_v41 = vpop.f32.mrb[65].mxu0 }
0x19b8   : > { %v2254_v44 = vpop.f32.mrb[66].mxu0 }
0x19b9   : > { %v2258_v45 = vpack.c.bf16 %v2254_v44, %v2251_v52  ;;  %v2845_v46 = vpop.f32.mrb[67].mxu0 }
0x19bb   : > { %2847 = vmatpush3.bf16.msra.mxu1 %v2258_v45 }
0x19be   : > { %2849 = vmatmul.mubr.msk.bf16.vlgmr.msra.gmra.mrb[64].mxu1 %vm518_vm3, %v2187_v48 }
0x1a91   : > { %v2296_v49 = vpop.f32.mrb[64].mxu1 }
0x1a92   : > { %2353 = vrot.lane.b32.xlu1 %v2296_v49, %s3326_s20  ;;  %v2850_v51 = vpop.f32.mrb[65].mxu1 }
0x1a93   : > { %v2299_v53 = vpop.f32.mrb[66].mxu1 }
0x1a94   : > { %2355 = vrot.lane.b32.xlu0 %v2299_v53, %s3326_s20  ;;  %v2851_v54 = vpop.f32.mrb[67].mxu1 }
0x1b04   : > { %v2354_v13 = vpop.permute.xlu1 %2353 }
0x1b05   : > { %v2376_v22 = vsel %vm2375_vm8, %v2373_v10, %v2354_v13 }
0x1b06   : > { %2378 = vst.msk [vmem:[%s284_s25] sm:$0xff] %vm311_vm1, %v2376_v22  ;;  %v2356_v17 = vpop.permute.xlu0 %2355 }
0x1b07   : > { %v2377_v18 = vsel %vm2375_vm8, %v2374_v16, %v2356_v17 }
0x1b08   : > { %2379 = vst.msk [vmem:[%s284_s25 + $0x8] sm:$0xff] %vm311_vm1, %v2377_v18 }
0x1b09   : > { %3222 = shalt.err (!%p3219_p7)
}
0x1b0a   : > { %s3223_s30 = scalar_lea.hbm %s3905_s19, 256  ;;  %s3227_s28 = scalar_lea.hbm %s3955_s4, 512 }
0x1b0b   : > { %p3224_p9 = scmp.ne.s32.totalorder %s3905_s19, %s3223_s30  ;;  %p3228_p11 = scmp.lt.u32.totalorder %s3905_s19, %s3955_s4 }
0x1b0c   : > { %p3229_p2 = scmp.lt.u32.totalorder %s3227_s28, %s3223_s30  ;;  %p3231_p1 = scmp.lt.u32.totalorder %s3223_s30, %s3905_s19 }
0x1b0d   : > { %p3225_p0 = pnand %p3224_p9, %p3979_p13 }
0x1b0e   : > { %p3230_p12 = por %p3229_p2, %p3228_p11 }
0x1b0f   : > { %p3226_p8 = pneg %p3225_p0 }
0x1b10   : > { %p3232_p6 = por %p3231_p1, %p3230_p12 }
0x1b12   : > { %p3233_p10 = pnand %p3232_p6, %p3226_p8 }
0x1b14   : > { %3236 = shalt.err (!%p3233_p10)
}
0x1b15   : > { %s3328_s25 = smov 128  }
0x1b16   : > { %2864 = dma.vmem_to_hbm [thread:$0]  (%p3979_p13), %s3899_s9, 256, %s3905_s19, %s2381_s10, %s3328_s25, %s3328_s25, %s3322_s6  }
0x1b17 PF: > { %s2409_s23 = sand.u32 1, %s3275_s15   ;;  %p3980_p4 = scmp.ne.s32.totalorder %s3965_s22, 0 }
0x1b18   : > { %p3981_p5 = scmp.ge.s32.totalorder %s3287_s18, 2  ;;  %s2410_s21 = scalar_lea.sflag [#allocation4], %s2409_s23 }
0x1b1a   : > { %p2881_p3 = pnand %p3981_p5, %p3980_p4 }
0x1b1c   : > { %3270 = dma.done.wait (!%p2881_p3), %s2410_s21, 256  }
0x1b1d   : > { %3272 = vsyncadd (!%p2881_p3), %s2410_s21, 4294967040  ;;  %p21_p7 = scmp.ge.s32.totalorder %s3470_s26, 4   ;;  %s3982_s15 = smov %s3279_s16 }
0x1b1e   : > { %s3983_s16 = smov %s3283_s17  ;;  %s3984_s17 = smov %s3486_s14 }
0x1b1f   : > { %s3985_s18 = smov %s3470_s26  ;;  %23 = sbr.rel (!%p21_p7) target bundleno = 10 (0xa), region = 102 }
0x1b26   :  { %2415 = vsyncpa [#allocation3], 1 }
0x1b27   :  { %2417 = vsyncpa [#allocation3 + $0x1], 1 }
0x1b28   :  { %2418 = vsyncpa [#allocation6], 1 }
0x1b29   :  { %2420 = vsyncpa [#allocation6 + $0x1], 1 }
0x1b2a   :  { %2421 = vsyncpa [#allocation9], 1 }
0x1b2b   :  { %2422 = vsyncpa [#allocation4], 1 }
0x1b2c   :  { %2424 = vsyncpa [#allocation4 + $0x1], 1 }

</bundles_post_ra>
